<compile_context>
chip_gen: v5e
topology: v5e:2x2
jax: 0.10.0
libtpu: 0.0.40
codegen_flags: <defaults>
</compile_context>

<pallas_src>
import jax
import jax.numpy as jnp
import numpy as np
from jax import lax
from jax.experimental import pallas as pl
from jax.experimental.pallas import tpu as pltpu


# ----------------------------------------------------------------------------
# Static helpers (trace-time numpy; depend only on shapes)
# ----------------------------------------------------------------------------
def _interp_coeffs(out_size: int, in_size: int):
    """PyTorch bilinear align_corners=False (half-pixel) 1-D coefficients."""
    scale = in_size / out_size
    d = np.arange(out_size, dtype=np.float64)
    src = np.maximum(scale * (d + 0.5) - 0.5, 0.0)        # PyTorch clamps at 0
    i0 = np.floor(src).astype(np.int64)
    lam = (src - i0).astype(np.float32)
    i0 = np.clip(i0, 0, in_size - 1)
    i1 = np.minimum(i0 + 1, in_size - 1)
    return i0, i1, lam


def _interp_matrix_T(out_size: int, in_size: int) -> np.ndarray:
    """(in_size, out_size) matrix M with out = x @ M (1-D bilinear resize)."""
    i0, i1, lam = _interp_coeffs(out_size, in_size)
    m = np.zeros((in_size, out_size), np.float32)
    for o in range(out_size):
        m[i0[o], o] += 1.0 - lam[o]
        m[i1[o], o] += lam[o]
    return m


def _conv_gather_matrix(N, H, W, Ho, Wo, stride):
    """0/1 gather G such that  cols = x(C, N*H*W) @ G  is the (per-tap) im2col.

    G[n*H*W + ih*W + iw, tap*(N*Ho*Wo) + n*Ho*Wo + oh*Wo + ow] = 1   where
      ih = stride*oh + ky - 1,  iw = stride*ow + kx - 1   (3x3 kernel, pad = 1),
      tap = ky*3 + kx.  Out-of-bounds taps are simply absent (zero padding).
    """
    HW, HoWo = H * W, Ho * Wo
    g = np.zeros((N * HW, 9 * N * HoWo), np.float32)
    for ky in range(3):
        for kx in range(3):
            tap = ky * 3 + kx
            for oh in range(Ho):
                ih = stride * oh + ky - 1
                if not (0 <= ih < H):
                    continue
                for ow in range(Wo):
                    iw = stride * ow + kx - 1
                    if not (0 <= iw < W):
                        continue
                    for n in range(N):
                        g[n * HW + ih * W + iw,
                          tap * N * HoWo + n * HoWo + oh * Wo + ow] = 1.0
    return g


def _upsample_matrix(N, Hf, Wf, H, W):
    """(N*Hf*Wf, N*H*W) bilinear align_corners=False matrix, block-diag over N."""
    mh = _interp_matrix_T(H, Hf)            # (Hf, H)
    mw = _interp_matrix_T(W, Wf)            # (Wf, W)
    blk = np.kron(mh, mw)                   # (Hf*Wf, H*W): Mh[fh,oh]*Mw[fw,ow]
    u = np.zeros((N * Hf * Wf, N * H * W), np.float32)
    for n in range(N):
        u[n * Hf * Wf:(n + 1) * Hf * Wf, n * H * W:(n + 1) * H * W] = blk
    return u


def _conv_weight_matrix(w_hwio):
    """HWIO (K,K,Ci,Co) -> (Co, K*K*Ci); columns ordered tap-major, channel-minor."""
    K, _, Ci, Co = w_hwio.shape
    return jnp.transpose(w_hwio, (3, 0, 1, 2)).reshape(Co, K * K * Ci)


# ----------------------------------------------------------------------------
# Fused FCN kernel (single invocation, everything resident in VMEM)
# ----------------------------------------------------------------------------
def _make_fcn_kernel(N, H, W):
    HW = H * W
    Hf, Wf = H // 2, W // 2
    NL = N * Hf * Wf                      # lane width of all feature maps (128)

    def dot(a, b):
        # Mosaic keeps f32 matmuls accurate (multi-pass MXU); f32 accumulate.
        return jnp.dot(a, b, preferred_element_type=jnp.float32)

    def kernel(x_ref, wb_ref, bb_ref, wc1_ref, bc1_ref, wc2_ref, bc2_ref,
               g1_ref, g2_ref, up_ref, o_ref):
        # ---- fold batch into the lane axis: (Cin, N*H*W) -------------------
        # x_ref[n] is a whole-tile (Cin, H*W) read; concat offsets are
        # multiples of 256 lanes (tile-aligned).
        xc = jnp.concatenate([x_ref[n] for n in range(N)], axis=1)

        # ---- backbone: 3x3 / stride 2 / pad 1 + ReLU ------------------------
        # im2col on the MXU: one 0/1 gather matmul, then 9 lane-aligned slabs
        # stacked on the contraction (sublane) axis.
        cols = dot(xc, g1_ref[...])                              # (Cin, 9*NL)
        im2col = jnp.concatenate(
            [cols[:, t * NL:(t + 1) * NL] for t in range(9)], axis=0)
        y = jnp.maximum(dot(wb_ref[...], im2col) + bb_ref[...], 0.0)   # (C1, NL)

        # ---- classifier conv1: 3x3 / pad 1 + ReLU ---------------------------
        cols = dot(y, g2_ref[...])                               # (C1, 9*NL)
        im2col = jnp.concatenate(
            [cols[:, t * NL:(t + 1) * NL] for t in range(9)], axis=0)
        z = jnp.maximum(dot(wc1_ref[...], im2col) + bc1_ref[...], 0.0)  # (C2, NL)

        # ---- classifier conv2: 1x1 ------------------------------------------
        logits = dot(wc2_ref[...], z) + bc2_ref[...]             # (NC, NL)

        # ---- bilinear upsample: H, W and batch block-diag in ONE matmul -----
        up = dot(logits, up_ref[...])                            # (NC, N*H*W)

        # lane-dense output block (last dim = H*W = 256), per-image rows
        for n in range(N):
            o_ref[n] = up[:, n * HW:(n + 1) * HW].astype(o_ref.dtype)

    return kernel


# ----------------------------------------------------------------------------
# Parameters + wrapper
# ----------------------------------------------------------------------------
def init_params(key, in_ch=4, feat_ch=16, head_ch=8, num_classes=3):
    k = jax.random.split(key, 6)
    return {
        # backbone: Conv2d(in_ch, feat_ch, k=3, stride=2, pad=1)
        "bb_w": jax.random.normal(k[0], (3, 3, in_ch, feat_ch), jnp.float32) * 0.1,
        "bb_b": jax.random.normal(k[1], (feat_ch,), jnp.float32) * 0.01,
        # classifier (FCN head): Conv2d(feat_ch, head_ch, k=3, pad=1) + ReLU
        "cl1_w": jax.random.normal(k[2], (3, 3, feat_ch, head_ch), jnp.float32) * 0.1,
        "cl1_b": jax.random.normal(k[3], (head_ch,), jnp.float32) * 0.01,
        # classifier final: Conv2d(head_ch, num_classes, k=1)
        "cl2_w": jax.random.normal(k[4], (1, 1, head_ch, num_classes), jnp.float32) * 0.1,
        "cl2_b": jax.random.normal(k[5], (num_classes,), jnp.float32) * 0.01,
    }


@jax.jit
def fcn_forward(x_nchw, params):
    """Mirrors FCN.forward: backbone -> classifier -> bilinear up to input HW."""
    N, Cin, H, W = x_nchw.shape
    assert H % 2 == 0 and W % 2 == 0, "toy stride-2 backbone assumes even H, W"
    Hf, Wf = H // 2, W // 2
    C1 = params["bb_w"].shape[3]
    C2 = params["cl1_w"].shape[3]
    NC = params["cl2_w"].shape[3]

    # matmul-form weights / column biases (tiny, reformatted once per call)
    wb = _conv_weight_matrix(params["bb_w"])             # (C1, 9*Cin)
    wc1 = _conv_weight_matrix(params["cl1_w"])           # (C2, 9*C1)
    wc2 = _conv_weight_matrix(params["cl2_w"])           # (NC, C2)
    bb = params["bb_b"].reshape(C1, 1)
    bc1 = params["cl1_b"].reshape(C2, 1)
    bc2 = params["cl2_b"].reshape(NC, 1)

    # shape-only 0/1 gather + interpolation matrices (trace-time constants)
    g1 = jnp.asarray(_conv_gather_matrix(N, H, W, Hf, Wf, stride=2))    # (N*H*W,  9*N*Hf*Wf)
    g2 = jnp.asarray(_conv_gather_matrix(N, Hf, Wf, Hf, Wf, stride=1))  # (N*Hf*Wf, 9*N*Hf*Wf)
    up = jnp.asarray(_upsample_matrix(N, Hf, Wf, H, W))                 # (N*Hf*Wf, N*H*W)

    # NCHW -> (N, Cin, H*W): pure reshape, no transpose / copy
    x3 = x_nchw.reshape(N, Cin, H * W)

    in_specs = [pl.BlockSpec(memory_space=pltpu.MemorySpace.VMEM)
                for _ in range(10)]
    out_nchw_flat = pl.pallas_call(
        _make_fcn_kernel(N, H, W),
        out_shape=jax.ShapeDtypeStruct((N, NC, H * W), jnp.float32),
        in_specs=in_specs,
        out_specs=pl.BlockSpec(memory_space=pltpu.MemorySpace.VMEM),
    )(x3, wb, bb, wc1, bc1, wc2, bc2, g1, g2, up)

    # (N, NC, H*W) -> NCHW: pure reshape
    return {"out": out_nchw_flat.reshape(N, NC, H, W)}


# ----------------------------------------------------------------------------
# Pure-JAX reference (independent check of the fused kernel)
# ----------------------------------------------------------------------------
def _conv_ref(x_nhwc, w, b, stride, padding, relu):
    dn = lax.conv_dimension_numbers(x_nhwc.shape, w.shape, ("NHWC", "HWIO", "NHWC"))
    y = lax.conv_general_dilated(x_nhwc, w, (stride, stride),
                                 [(padding, padding)] * 2, dimension_numbers=dn,
                                 precision=lax.Precision.HIGHEST)
    y = y + b.reshape(1, 1, 1, -1)
    if relu:
        y = jnp.maximum(y, 0.0)
    return y


def fcn_forward_ref(x_nchw, params):
    N, Cin, H, W = x_nchw.shape
    x = jnp.transpose(x_nchw, (0, 2, 3, 1))
    y = _conv_ref(x, params["bb_w"], params["bb_b"], 2, 1, True)
    y = _conv_ref(y, params["cl1_w"], params["cl1_b"], 1, 1, True)
    y = _conv_ref(y, params["cl2_w"], params["cl2_b"], 1, 0, False)
    hf, wf = y.shape[1], y.shape[2]
    mh = jnp.asarray(_interp_matrix_T(H, hf).T)          # (H, hf)
    mw = jnp.asarray(_interp_matrix_T(W, wf).T)          # (W, wf)
    y = jnp.einsum("oh,nhwc->nowc", mh, y, precision=lax.Precision.HIGHEST)
    y = jnp.einsum("pw,nhwc->nhpc", mw, y, precision=lax.Precision.HIGHEST)
    return {"out": jnp.transpose(y, (0, 3, 1, 2))}


if __name__ == "__main__":
    key = jax.random.PRNGKey(0)
    kx, kp = jax.random.split(key)
    x = jax.random.normal(kx, (2, 4, 16, 16), jnp.float32)    # NCHW, like PyTorch
    params = init_params(kp)

    out = fcn_forward(x, params)
    jax.block_until_ready(out["out"])
    assert out["out"].shape == (2, 3, 16, 16)

    ref = fcn_forward_ref(x, params)
    np.testing.assert_allclose(np.asarray(out["out"]), np.asarray(ref["out"]),
                               rtol=1e-3, atol=1e-3)
    print("KERNEL_OK")
</pallas_src>

<mosaic_0001>
module attributes {stable_mosaic.version = 11 : i64} {
  func.func @kernel(%arg0: memref<2x4x256xf32, #tpu.memory_space<vmem>>, %arg1: memref<16x36xf32, #tpu.memory_space<vmem>>, %arg2: memref<16x1xf32, #tpu.memory_space<vmem>>, %arg3: memref<8x144xf32, #tpu.memory_space<vmem>>, %arg4: memref<8x1xf32, #tpu.memory_space<vmem>>, %arg5: memref<3x8xf32, #tpu.memory_space<vmem>>, %arg6: memref<3x1xf32, #tpu.memory_space<vmem>>, %arg7: memref<512x1152xf32, #tpu.memory_space<vmem>>, %arg8: memref<128x1152xf32, #tpu.memory_space<vmem>>, %arg9: memref<128x512xf32, #tpu.memory_space<vmem>>, %arg10: memref<2x3x256xf32, #tpu.memory_space<vmem>>) attributes {dimension_semantics = [], scalar_prefetch = 0 : i64, scratch_operands = 0 : i64, tpu.core_type = #tpu.core_type<tc>} {
    %c0 = arith.constant 0 : index
    %c0_0 = arith.constant 0 : index
    %c0_1 = arith.constant 0 : index
    %0 = vector.load %arg0[%c0, %c0_0, %c0_1] : memref<2x4x256xf32, #tpu.memory_space<vmem>>, vector<1x4x256xf32>
    %1 = vector.shape_cast %0 : vector<1x4x256xf32> to vector<4x256xf32>
    %c1 = arith.constant 1 : index
    %c0_2 = arith.constant 0 : index
    %c0_3 = arith.constant 0 : index
    %2 = vector.load %arg0[%c1, %c0_2, %c0_3] : memref<2x4x256xf32, #tpu.memory_space<vmem>>, vector<1x4x256xf32>
    %3 = vector.shape_cast %2 : vector<1x4x256xf32> to vector<4x256xf32>
    %4 = tpu.concatenate %1, %3 in 1 : vector<4x256xf32>, vector<4x256xf32> -> vector<4x512xf32>
    %c0_4 = arith.constant 0 : index
    %c0_5 = arith.constant 0 : index
    %5 = vector.load %arg7[%c0_4, %c0_5] : memref<512x1152xf32, #tpu.memory_space<vmem>>, vector<512x1152xf32>
    %cst = arith.constant dense<0.000000e+00> : vector<4x1152xf32>
    %6 = tpu.matmul %4, %5, %cst {dimension_numbers = #tpu.dot_dimension_numbers<[1], [0], [0], [1], [0, 0, 1, 1], [], []>} : vector<4x512xf32>, vector<512x1152xf32>, vector<4x1152xf32> -> vector<4x1152xf32>
    %7 = vector.extract_strided_slice %6 {offsets = [0, 0], sizes = [4, 128], strides = [1, 1]} : vector<4x1152xf32> to vector<4x128xf32>
    %8 = vector.extract_strided_slice %6 {offsets = [0, 128], sizes = [4, 128], strides = [1, 1]} : vector<4x1152xf32> to vector<4x128xf32>
    %9 = vector.extract_strided_slice %6 {offsets = [0, 256], sizes = [4, 128], strides = [1, 1]} : vector<4x1152xf32> to vector<4x128xf32>
    %10 = vector.extract_strided_slice %6 {offsets = [0, 384], sizes = [4, 128], strides = [1, 1]} : vector<4x1152xf32> to vector<4x128xf32>
    %11 = vector.extract_strided_slice %6 {offsets = [0, 512], sizes = [4, 128], strides = [1, 1]} : vector<4x1152xf32> to vector<4x128xf32>
    %12 = vector.extract_strided_slice %6 {offsets = [0, 640], sizes = [4, 128], strides = [1, 1]} : vector<4x1152xf32> to vector<4x128xf32>
    %13 = vector.extract_strided_slice %6 {offsets = [0, 768], sizes = [4, 128], strides = [1, 1]} : vector<4x1152xf32> to vector<4x128xf32>
    %14 = vector.extract_strided_slice %6 {offsets = [0, 896], sizes = [4, 128], strides = [1, 1]} : vector<4x1152xf32> to vector<4x128xf32>
    %15 = vector.extract_strided_slice %6 {offsets = [0, 1024], sizes = [4, 128], strides = [1, 1]} : vector<4x1152xf32> to vector<4x128xf32>
    %16 = tpu.concatenate %7, %8, %9, %10, %11, %12, %13, %14, %15 in 0 : vector<4x128xf32>, vector<4x128xf32>, vector<4x128xf32>, vector<4x128xf32>, vector<4x128xf32>, vector<4x128xf32>, vector<4x128xf32>, vector<4x128xf32>, vector<4x128xf32> -> vector<36x128xf32>
    %c0_6 = arith.constant 0 : index
    %c0_7 = arith.constant 0 : index
    %17 = vector.load %arg1[%c0_6, %c0_7] : memref<16x36xf32, #tpu.memory_space<vmem>>, vector<16x36xf32>
    %cst_8 = arith.constant dense<0.000000e+00> : vector<16x128xf32>
    %18 = tpu.matmul %17, %16, %cst_8 {dimension_numbers = #tpu.dot_dimension_numbers<[1], [0], [0], [1], [0, 0, 1, 1], [], []>} : vector<16x36xf32>, vector<36x128xf32>, vector<16x128xf32> -> vector<16x128xf32>
    %c0_9 = arith.constant 0 : index
    %c0_10 = arith.constant 0 : index
    %19 = vector.load %arg2[%c0_9, %c0_10] : memref<16x1xf32, #tpu.memory_space<vmem>>, vector<16x1xf32>
    %20 = vector.broadcast %19 : vector<16x1xf32> to vector<16x128xf32>
    %21 = arith.addf %18, %20 : vector<16x128xf32>
    %cst_11 = arith.constant 0.000000e+00 : f32
    %22 = vector.broadcast %cst_11 : f32 to vector<16x128xf32>
    %23 = arith.maximumf %21, %22 : vector<16x128xf32>
    %c0_12 = arith.constant 0 : index
    %c0_13 = arith.constant 0 : index
    %24 = vector.load %arg8[%c0_12, %c0_13] : memref<128x1152xf32, #tpu.memory_space<vmem>>, vector<128x1152xf32>
    %cst_14 = arith.constant dense<0.000000e+00> : vector<16x1152xf32>
    %25 = tpu.matmul %23, %24, %cst_14 {dimension_numbers = #tpu.dot_dimension_numbers<[1], [0], [0], [1], [0, 0, 1, 1], [], []>} : vector<16x128xf32>, vector<128x1152xf32>, vector<16x1152xf32> -> vector<16x1152xf32>
    %26 = vector.extract_strided_slice %25 {offsets = [0, 0], sizes = [16, 128], strides = [1, 1]} : vector<16x1152xf32> to vector<16x128xf32>
    %27 = vector.extract_strided_slice %25 {offsets = [0, 128], sizes = [16, 128], strides = [1, 1]} : vector<16x1152xf32> to vector<16x128xf32>
    %28 = vector.extract_strided_slice %25 {offsets = [0, 256], sizes = [16, 128], strides = [1, 1]} : vector<16x1152xf32> to vector<16x128xf32>
    %29 = vector.extract_strided_slice %25 {offsets = [0, 384], sizes = [16, 128], strides = [1, 1]} : vector<16x1152xf32> to vector<16x128xf32>
    %30 = vector.extract_strided_slice %25 {offsets = [0, 512], sizes = [16, 128], strides = [1, 1]} : vector<16x1152xf32> to vector<16x128xf32>
    %31 = vector.extract_strided_slice %25 {offsets = [0, 640], sizes = [16, 128], strides = [1, 1]} : vector<16x1152xf32> to vector<16x128xf32>
    %32 = vector.extract_strided_slice %25 {offsets = [0, 768], sizes = [16, 128], strides = [1, 1]} : vector<16x1152xf32> to vector<16x128xf32>
    %33 = vector.extract_strided_slice %25 {offsets = [0, 896], sizes = [16, 128], strides = [1, 1]} : vector<16x1152xf32> to vector<16x128xf32>
    %34 = vector.extract_strided_slice %25 {offsets = [0, 1024], sizes = [16, 128], strides = [1, 1]} : vector<16x1152xf32> to vector<16x128xf32>
    %35 = tpu.concatenate %26, %27, %28, %29, %30, %31, %32, %33, %34 in 0 : vector<16x128xf32>, vector<16x128xf32>, vector<16x128xf32>, vector<16x128xf32>, vector<16x128xf32>, vector<16x128xf32>, vector<16x128xf32>, vector<16x128xf32>, vector<16x128xf32> -> vector<144x128xf32>
    %c0_15 = arith.constant 0 : index
    %c0_16 = arith.constant 0 : index
    %36 = vector.load %arg3[%c0_15, %c0_16] : memref<8x144xf32, #tpu.memory_space<vmem>>, vector<8x144xf32>
    %cst_17 = arith.constant dense<0.000000e+00> : vector<8x128xf32>
    %37 = tpu.matmul %36, %35, %cst_17 {dimension_numbers = #tpu.dot_dimension_numbers<[1], [0], [0], [1], [0, 0, 1, 1], [], []>} : vector<8x144xf32>, vector<144x128xf32>, vector<8x128xf32> -> vector<8x128xf32>
    %c0_18 = arith.constant 0 : index
    %c0_19 = arith.constant 0 : index
    %38 = vector.load %arg4[%c0_18, %c0_19] : memref<8x1xf32, #tpu.memory_space<vmem>>, vector<8x1xf32>
    %39 = vector.broadcast %38 : vector<8x1xf32> to vector<8x128xf32>
    %40 = arith.addf %37, %39 : vector<8x128xf32>
    %cst_20 = arith.constant 0.000000e+00 : f32
    %41 = vector.broadcast %cst_20 : f32 to vector<8x128xf32>
    %42 = arith.maximumf %40, %41 : vector<8x128xf32>
    %c0_21 = arith.constant 0 : index
    %c0_22 = arith.constant 0 : index
    %43 = vector.load %arg5[%c0_21, %c0_22] : memref<3x8xf32, #tpu.memory_space<vmem>>, vector<3x8xf32>
    %cst_23 = arith.constant dense<0.000000e+00> : vector<3x128xf32>
    %44 = tpu.matmul %43, %42, %cst_23 {dimension_numbers = #tpu.dot_dimension_numbers<[1], [0], [0], [1], [0, 0, 1, 1], [], []>} : vector<3x8xf32>, vector<8x128xf32>, vector<3x128xf32> -> vector<3x128xf32>
    %c0_24 = arith.constant 0 : index
    %c0_25 = arith.constant 0 : index
    %45 = vector.load %arg6[%c0_24, %c0_25] : memref<3x1xf32, #tpu.memory_space<vmem>>, vector<3x1xf32>
    %46 = vector.broadcast %45 : vector<3x1xf32> to vector<3x128xf32>
    %47 = arith.addf %44, %46 : vector<3x128xf32>
    %c0_26 = arith.constant 0 : index
    %c0_27 = arith.constant 0 : index
    %48 = vector.load %arg9[%c0_26, %c0_27] : memref<128x512xf32, #tpu.memory_space<vmem>>, vector<128x512xf32>
    %cst_28 = arith.constant dense<0.000000e+00> : vector<3x512xf32>
    %49 = tpu.matmul %47, %48, %cst_28 {dimension_numbers = #tpu.dot_dimension_numbers<[1], [0], [0], [1], [0, 0, 1, 1], [], []>} : vector<3x128xf32>, vector<128x512xf32>, vector<3x512xf32> -> vector<3x512xf32>
    %50 = vector.extract_strided_slice %49 {offsets = [0, 0], sizes = [3, 256], strides = [1, 1]} : vector<3x512xf32> to vector<3x256xf32>
    %c0_29 = arith.constant 0 : index
    %c0_30 = arith.constant 0 : index
    %c0_31 = arith.constant 0 : index
    %51 = vector.load %arg10[%c0_29, %c0_30, %c0_31] : memref<2x3x256xf32, #tpu.memory_space<vmem>>, vector<1x3x256xf32>
    %52 = vector.shape_cast %51 : vector<1x3x256xf32> to vector<3x256xf32>
    %53 = vector.shape_cast %50 : vector<3x256xf32> to vector<1x3x256xf32>
    tpu.vector_store %arg10[%c0_29, %c0_30, %c0_31], %53 {strides = array<i32>} : memref<2x3x256xf32, #tpu.memory_space<vmem>>, vector<1x3x256xf32>,
    %54 = vector.extract_strided_slice %49 {offsets = [0, 256], sizes = [3, 256], strides = [1, 1]} : vector<3x512xf32> to vector<3x256xf32>
    %c1_32 = arith.constant 1 : index
    %c0_33 = arith.constant 0 : index
    %c0_34 = arith.constant 0 : index
    %55 = vector.load %arg10[%c1_32, %c0_33, %c0_34] : memref<2x3x256xf32, #tpu.memory_space<vmem>>, vector<1x3x256xf32>
    %56 = vector.shape_cast %55 : vector<1x3x256xf32> to vector<3x256xf32>
    %57 = vector.shape_cast %54 : vector<3x256xf32> to vector<1x3x256xf32>
    tpu.vector_store %arg10[%c1_32, %c0_33, %c0_34], %57 {strides = array<i32>} : memref<2x3x256xf32, #tpu.memory_space<vmem>>, vector<1x3x256xf32>,
    return
  }
}

</mosaic_0001>

<bundles_post_ra>
// kernel: fcn_forward.1
= control target key start
LH: loop header
LB: loop body
LE: loop exit
PB: predicated region body
PF: predicated region fallthrough
CT: control target
= control target key end

     0   :  { %15 = vsyncpa [#allocation3], 0  ;;  %s2353_s0 = inlined_call_operand.vmem [shape: f32[2,4,256], index: 0, kind: input, shape index: {}]   ;;  %s2354_s1 = inlined_call_operand.vmem [shape: f32[16,36], index: 1, kind: input, shape index: {}]   ;;  %s2355_s2 = inlined_call_operand.vmem [shape: f32[16,1], index: 2, kind: input, shape index: {}]   ;;  %s2356_s3 = inlined_call_operand.vmem [shape: f32[8,144], index: 3, kind: input, shape index: {}]   ;;  %s2357_s4 = inlined_call_operand.vmem [shape: f32[8,1], index: 4, kind: input, shape index: {}]   ;;  %s2358_s5 = inlined_call_operand.vmem [shape: f32[3,8], index: 5, kind: input, shape index: {}]   ;;  %s2359_s6 = inlined_call_operand.vmem [shape: f32[3,1], index: 6, kind: input, shape index: {}]   ;;  %s2360_s7 = inlined_call_operand.hbm [shape: f32[512,1152], index: 7, kind: input, shape index: {}]   ;;  %s2361_s8 = inlined_call_operand.hbm [shape: f32[128,1152], index: 8, kind: input, shape index: {}]   ;;  %s2362_s9 = inlined_call_operand.hbm [shape: f32[128,512], index: 9, kind: input, shape index: {}]   ;;  %s2363_s10 = inlined_call_operand.vmem [shape: f32[2,3,256], index: 10, kind: output, shape index: {}]  }
   0x1   :  { %16 = vsyncpa [#allocation5], 0  ;;  %s48_s15 = sshll.u32 %s2361_s8, 4  ;;  %s2152_s16 = smov [#allocation4]   ;;  %s49_s15 = int_to_ptr.hbm [resolvable:$true] %s48_s15 }
   0x2   :  { %s50_s17 = sshll.u32 %s2152_s16, 4  ;;  %s35_s20 = sshll.u32 %s2360_s7, 4  ;;  %s51_s17 = int_to_ptr.vmem [resolvable:$true] %s50_s17  ;;  %s36_s20 = int_to_ptr.hbm [resolvable:$true] %s35_s20 }
   0x3   :  { %s2153_s21 = smov 1152   ;;  %s2154_s22 = smov 72  }
   0x4   :  { %56 = dma.hbm_to_vmem [thread:$0]  %s49_s15, 18432, %s51_s17, [#allocation5], %s2153_s21, %s2153_s21, %s2154_s22  }
   0x5   :  { %s2155_s23 = smov [#allocation2]   ;;  %s61_s27 = sshll.u32 %s2362_s9, 4  ;;  %s62_s27 = int_to_ptr.hbm [resolvable:$true] %s61_s27 }
   0x6   :  { %s37_s24 = sshll.u32 %s2155_s23, 4  ;;  %s2156_s8 = smov [#allocation6]   ;;  %s38_s24 = int_to_ptr.vmem [resolvable:$true] %s37_s24 }
   0x7   :  { %43 = dma.hbm_to_vmem [thread:$0]  %s36_s20, 73728, %s38_s24, [#allocation3], %s2153_s21, %s2153_s21, %s2154_s22  }
   0x8   :  { %s63_s28 = sshll.u32 %s2156_s8, 4  ;;  %s2157_s29 = smov 512   ;;  %s64_s28 = int_to_ptr.vmem [resolvable:$true] %s63_s28 }
   0x9   :  { %s2158_s30 = smov 32  }
   0xa   :  { %69 = dma.hbm_to_vmem [thread:$0]  %s62_s27, 8192, %s64_s28, [#allocation5], %s2157_s29, %s2157_s29, %s2158_s30  }
   0xb   :  { %2148 = dma.done.wait [#allocation3], 73728  }
   0xc   :  { %2149 = vsyncadd [#allocation3], 4294893568 }
   0xd   :  { %2150 = dma.done.wait [#allocation5], 26624  }
   0xe   :  { %2151 = vsyncadd [#allocation5], 4294940672  ;;  %v520_v0 = vld [vmem:[#allocation2 + $0xd38] sm:$0xff]  ;;  %v511_v1 = vld [vmem:[#allocation2 + $0xcf0] sm:$0xff]  ;;  %vm1405_vm0 = vcmask 1043456   ;;  %vm1424_vm1 = vcmask 293888  }
   0xf   :  { %v664_v2 = vld [vmem:[#allocation2 + $0x11b8] sm:$0xff]  ;;  %713 = vmatpush.msra.mxu2 %v520_v0  ;;  %v502_v5 = vld [vmem:[#allocation2 + $0xca8] sm:$0xff]  ;;  %v655_v6 = vld [vmem:[#allocation2 + $0x1170] sm:$0xff]  ;;  %vm1818_vm2 = vcmask 130048   ;;  %vm1870_vm3 = vcmask 64512  }
  0x10   :  { %733 = vmatpush.msra.mxu3 %v664_v2  ;;  %v232_v3 = vld [vmem:[#allocation2 + $0x438] sm:$0xff]  ;;  %v223_v7 = vld [vmem:[#allocation2 + $0x3f0] sm:$0xff]  ;;  %v646_v9 = vld [vmem:[#allocation2 + $0x1128] sm:$0xff] }
  0x11   :  { %v376_v4 = vld [vmem:[#allocation2 + $0x8b8] sm:$0xff]  ;;  %673 = vmatpush.msra.mxu0 %v232_v3  ;;  %v367_v8 = vld [vmem:[#allocation2 + $0x870] sm:$0xff]  ;;  %714 = vmatpush.msra.mxu2 %v511_v1  ;;  %v214_v10 = vld [vmem:[#allocation2 + $0x3a8] sm:$0xff] }
  0x12   :  { %693 = vmatpush.msra.mxu1 %v376_v4  ;;  %734 = vmatpush.msra.mxu3 %v655_v6  ;;  %v493_v11 = vld [vmem:[#allocation2 + $0xc60] sm:$0xff]  ;;  %v358_v12 = vld [vmem:[#allocation2 + $0x828] sm:$0xff]  ;;  %v484_v16 = vld [vmem:[#allocation2 + $0xc18] sm:$0xff] }
  0x13   :  { %674 = vmatpush.msra.mxu0 %v223_v7  ;;  %v637_v13 = vld [vmem:[#allocation2 + $0x10e0] sm:$0xff]  ;;  %715 = vmatpush.msra.mxu2 %v502_v5  ;;  %v628_v17 = vld [vmem:[#allocation2 + $0x1098] sm:$0xff]  ;;  %v475_v20 = vld [vmem:[#allocation2 + $0xbd0] sm:$0xff] }
  0x14   :  { %694 = vmatpush.msra.mxu1 %v367_v8  ;;  %735 = vmatpush.msra.mxu3 %v646_v9  ;;  %v205_v14 = vld [vmem:[#allocation2 + $0x360] sm:$0xff]  ;;  %v196_v18 = vld [vmem:[#allocation2 + $0x318] sm:$0xff]  ;;  %v619_v21 = vld [vmem:[#allocation2 + $0x1050] sm:$0xff] }
  0x15   :  { %v349_v15 = vld [vmem:[#allocation2 + $0x7e0] sm:$0xff]  ;;  %675 = vmatpush.msra.mxu0 %v214_v10  ;;  %716 = vmatpush.msra.mxu2 %v493_v11  ;;  %v340_v19 = vld [vmem:[#allocation2 + $0x798] sm:$0xff]  ;;  %v187_v22 = vld [vmem:[#allocation2 + $0x2d0] sm:$0xff] }
  0x16   :  { %695 = vmatpush.msra.mxu1 %v358_v12  ;;  %736 = vmatpush.msra.mxu3 %v637_v13  ;;  %v331_v23 = vld [vmem:[#allocation2 + $0x750] sm:$0xff]  ;;  %v466_v24 = vld [vmem:[#allocation2 + $0xb88] sm:$0xff]  ;;  %v457_v28 = vld [vmem:[#allocation2 + $0xb40] sm:$0xff] }
  0x17   :  { %676 = vmatpush.msra.mxu0 %v205_v14  ;;  %717 = vmatpush.msra.mxu2 %v484_v16  ;;  %v610_v25 = vld [vmem:[#allocation2 + $0x1008] sm:$0xff]  ;;  %v601_v29 = vld [vmem:[#allocation2 + $0xfc0] sm:$0xff]  ;;  %v448_v32 = vld [vmem:[#allocation2 + $0xaf8] sm:$0xff] }
  0x18   :  { %696 = vmatpush.msra.mxu1 %v349_v15  ;;  %737 = vmatpush.msra.mxu3 %v628_v17  ;;  %v178_v26 = vld [vmem:[#allocation2 + $0x288] sm:$0xff]  ;;  %v169_v30 = vld [vmem:[#allocation2 + $0x240] sm:$0xff]  ;;  %v592_v33 = vld [vmem:[#allocation2 + $0xf78] sm:$0xff] }
  0x19   :  { %677 = vmatpush.msra.mxu0 %v196_v18  ;;  %718 = vmatpush.msra.mxu2 %v475_v20  ;;  %v322_v27 = vld [vmem:[#allocation2 + $0x708] sm:$0xff]  ;;  %v313_v31 = vld [vmem:[#allocation2 + $0x6c0] sm:$0xff]  ;;  %v160_v34 = vld [vmem:[#allocation2 + $0x1f8] sm:$0xff] }
  0x1a   :  { %697 = vmatpush.msra.mxu1 %v340_v19  ;;  %738 = vmatpush.msra.mxu3 %v619_v21  ;;  %v304_v35 = vld [vmem:[#allocation2 + $0x678] sm:$0xff]  ;;  %v439_v36 = vld [vmem:[#allocation2 + $0xab0] sm:$0xff]  ;;  %v430_v40 = vld [vmem:[#allocation2 + $0xa68] sm:$0xff] }
  0x1b   :  { %678 = vmatpush.msra.mxu0 %v187_v22  ;;  %719 = vmatpush.msra.mxu2 %v466_v24  ;;  %v583_v37 = vld [vmem:[#allocation2 + $0xf30] sm:$0xff]  ;;  %v574_v41 = vld [vmem:[#allocation2 + $0xee8] sm:$0xff]  ;;  %v421_v44 = vld [vmem:[#allocation2 + $0xa20] sm:$0xff] }
  0x1c   :  { %698 = vmatpush.msra.mxu1 %v331_v23  ;;  %739 = vmatpush.msra.mxu3 %v610_v25  ;;  %v151_v38 = vld [vmem:[#allocation2 + $0x1b0] sm:$0xff]  ;;  %v142_v42 = vld [vmem:[#allocation2 + $0x168] sm:$0xff]  ;;  %v565_v45 = vld [vmem:[#allocation2 + $0xea0] sm:$0xff] }
  0x1d   :  { %679 = vmatpush.msra.mxu0 %v178_v26  ;;  %720 = vmatpush.msra.mxu2 %v457_v28  ;;  %v295_v39 = vld [vmem:[#allocation2 + $0x630] sm:$0xff]  ;;  %v286_v43 = vld [vmem:[#allocation2 + $0x5e8] sm:$0xff]  ;;  %v133_v46 = vld [vmem:[#allocation2 + $0x120] sm:$0xff] }
  0x1e   :  { %699 = vmatpush.msra.mxu1 %v322_v27  ;;  %740 = vmatpush.msra.mxu3 %v601_v29  ;;  %v277_v47 = vld [vmem:[#allocation2 + $0x5a0] sm:$0xff]  ;;  %v412_v48 = vld [vmem:[#allocation2 + $0x9d8] sm:$0xff]  ;;  %v403_v52 = vld [vmem:[#allocation2 + $0x990] sm:$0xff] }
  0x1f   :  { %680 = vmatpush.msra.mxu0 %v169_v30  ;;  %721 = vmatpush.msra.mxu2 %v448_v32  ;;  %v556_v49 = vld [vmem:[#allocation2 + $0xe58] sm:$0xff]  ;;  %v547_v53 = vld [vmem:[#allocation2 + $0xe10] sm:$0xff]  ;;  %v394_v56 = vld [vmem:[#allocation2 + $0x948] sm:$0xff] }
  0x20   :  { %700 = vmatpush.msra.mxu1 %v313_v31  ;;  %741 = vmatpush.msra.mxu3 %v592_v33  ;;  %v124_v50 = vld [vmem:[#allocation2 + $0xd8] sm:$0xff]  ;;  %v115_v54 = vld [vmem:[#allocation2 + $0x90] sm:$0xff]  ;;  %v538_v57 = vld [vmem:[#allocation2 + $0xdc8] sm:$0xff] }
  0x21   :  { %681 = vmatpush.msra.mxu0 %v160_v34  ;;  %722 = vmatpush.msra.mxu2 %v439_v36  ;;  %v268_v51 = vld [vmem:[#allocation2 + $0x558] sm:$0xff]  ;;  %v259_v55 = vld [vmem:[#allocation2 + $0x510] sm:$0xff]  ;;  %v106_v58 = vld [vmem:[#allocation2 + $0x48] sm:$0xff] }
  0x22   :  { %701 = vmatpush.msra.mxu1 %v304_v35  ;;  %742 = vmatpush.msra.mxu3 %v583_v37  ;;  %v250_v59 = vld [vmem:[#allocation2 + $0x4c8] sm:$0xff]  ;;  %v385_v60 = vld [vmem:[#allocation2 + $0x900] sm:$0xff]  ;;  %v512_v2 = vld [vmem:[#allocation2 + $0xcf8] sm:$0xff] }
  0x23   :  { %682 = vmatpush.msra.mxu0 %v151_v38  ;;  %723 = vmatpush.msra.mxu2 %v430_v40  ;;  %v529_v61 = vld [vmem:[#allocation2 + $0xd80] sm:$0xff]  ;;  %v656_v5 = vld [vmem:[#allocation2 + $0x1178] sm:$0xff]  ;;  %v503_v6 = vld [vmem:[#allocation2 + $0xcb0] sm:$0xff] }
  0x24   :  { %702 = vmatpush.msra.mxu1 %v295_v39  ;;  %743 = vmatpush.msra.mxu3 %v574_v41  ;;  %v521_v62 = vld [vmem:[#allocation2 + $0xd40] sm:$0xff]  ;;  %v224_v7 = vld [vmem:[#allocation2 + $0x3f8] sm:$0xff]  ;;  %v647_v9 = vld [vmem:[#allocation2 + $0x1130] sm:$0xff] }
  0x25   :  { %683 = vmatpush.msra.mxu0 %v142_v42  ;;  %724 = vmatpush.msra.mxu2 %v421_v44  ;;  %v665_v63 = vld [vmem:[#allocation2 + $0x11c0] sm:$0xff]  ;;  %v368_v8 = vld [vmem:[#allocation2 + $0x878] sm:$0xff]  ;;  %v494_v10 = vld [vmem:[#allocation2 + $0xc68] sm:$0xff] }
  0x26   :  { %703 = vmatpush.msra.mxu1 %v286_v43  ;;  %744 = vmatpush.msra.mxu3 %v565_v45  ;;  %v97_v0 = vld [vmem:[#allocation2] sm:$0xff]  ;;  %v215_v11 = vld [vmem:[#allocation2 + $0x3b0] sm:$0xff]  ;;  %v82_v12 = vld [vmem:[%s2353_s0] sm:$0xff] }
  0x27   :  { %684 = vmatpush.msra.mxu0 %v133_v46  ;;  %725 = vmatpush.msra.mxu2 %v412_v48  ;;  %v241_v1 = vld [vmem:[#allocation2 + $0x480] sm:$0xff]  ;;  %v359_v13 = vld [vmem:[#allocation2 + $0x830] sm:$0xff]  ;;  %v638_v14 = vld [vmem:[#allocation2 + $0x10e8] sm:$0xff]  ;;  %86 = vst [vmem:[#allocation1] ss:$2 sm:$0xff] %v82_v12 }
  0x28   :  { %704 = vmatpush.msra.mxu1 %v277_v47  ;;  %745 = vmatpush.msra.mxu3 %v556_v49  ;;  %v233_v3 = vld [vmem:[#allocation2 + $0x440] sm:$0xff]  ;;  %v206_v16 = vld [vmem:[#allocation2 + $0x368] sm:$0xff]  ;;  %v476_v19 = vld [vmem:[#allocation2 + $0xbd8] sm:$0xff] }
  0x29   :  { %685 = vmatpush.msra.mxu0 %v124_v50  ;;  %726 = vmatpush.msra.mxu2 %v403_v52  ;;  %v377_v4 = vld [vmem:[#allocation2 + $0x8c0] sm:$0xff]  ;;  %v350_v17 = vld [vmem:[#allocation2 + $0x7e8] sm:$0xff]  ;;  %v467_v22 = vld [vmem:[#allocation2 + $0xb90] sm:$0xff] }
  0x2a   :  { %705 = vmatpush.msra.mxu1 %v268_v51  ;;  %746 = vmatpush.msra.mxu3 %v547_v53  ;;  %v485_v15 = vld [vmem:[#allocation2 + $0xc20] sm:$0xff]  ;;  %v620_v23 = vld [vmem:[#allocation2 + $0x1058] sm:$0xff]  ;;  %v458_v27 = vld [vmem:[#allocation2 + $0xb48] sm:$0xff] }
  0x2b   :  { %686 = vmatpush.msra.mxu0 %v115_v54  ;;  %727 = vmatpush.msra.mxu2 %v394_v56  ;;  %v629_v18 = vld [vmem:[#allocation2 + $0x10a0] sm:$0xff]  ;;  %v188_v24 = vld [vmem:[#allocation2 + $0x2d8] sm:$0xff]  ;;  %v611_v28 = vld [vmem:[#allocation2 + $0x1010] sm:$0xff] }
  0x2c   :  { %706 = vmatpush.msra.mxu1 %v259_v55  ;;  %747 = vmatpush.msra.mxu3 %v538_v57  ;;  %v197_v20 = vld [vmem:[#allocation2 + $0x320] sm:$0xff]  ;;  %v332_v25 = vld [vmem:[#allocation2 + $0x758] sm:$0xff]  ;;  %v179_v29 = vld [vmem:[#allocation2 + $0x290] sm:$0xff] }
  0x2d   :  { %687 = vmatpush.msra.mxu0 %v106_v58  ;;  %728 = vmatpush.msra.mxu2 %v385_v60  ;;  %v341_v21 = vld [vmem:[#allocation2 + $0x7a0] sm:$0xff]  ;;  %v323_v32 = vld [vmem:[#allocation2 + $0x710] sm:$0xff]  ;;  %v602_v33 = vld [vmem:[#allocation2 + $0xfc8] sm:$0xff] }
  0x2e   :  { %707 = vmatpush.msra.mxu1 %v250_v59  ;;  %748 = vmatpush.msra.mxu3 %v529_v61  ;;  %v2057_v26 = vld [vmem:[%s2353_s0 + $0x8] sm:$0xff]  ;;  %v2230_v30 = vld.sshfl [vmem:[#allocation1] sm:$0xff pattern:$0x75316420]  ;;  %v170_v35 = vld [vmem:[#allocation2 + $0x248] sm:$0xff] }
  0x2f   :  { %793 = vmatpush.msrb.mxu2 %v521_v62  ;;  %688 = vmatpush.msra.mxu0 %v97_v0  ;;  %v2232_v31 = vld.sshfl [vmem:[#allocation1 + $0x8] sm:$0xff pattern:$0x75316420]  ;;  %v314_v36 = vld [vmem:[#allocation2 + $0x6c8] sm:$0xff]  ;;  %v440_v38 = vld [vmem:[#allocation2 + $0xab8] sm:$0xff] }
  0x30   :  { %813 = vmatpush.msrb.mxu3 %v665_v63  ;;  %708 = vmatpush.msra.mxu1 %v241_v1  ;;  %92 = vst [vmem:[#allocation1] ss:$2 sm:$0xff] %v2057_v26  ;;  %v449_v34 = vld [vmem:[#allocation2 + $0xb00] sm:$0xff]  ;;  %v584_v41 = vld [vmem:[#allocation2 + $0xf38] sm:$0xff]  ;;  %v431_v42 = vld [vmem:[#allocation2 + $0xa70] sm:$0xff] }
  0x31   :  { %794 = vmatpush.msrb.mxu2 %v512_v2  ;;  %753 = vmatpush.msrb.mxu0 %v233_v3  ;;  %v593_v37 = vld [vmem:[#allocation2 + $0xf80] sm:$0xff]  ;;  %v152_v43 = vld [vmem:[#allocation2 + $0x1b8] sm:$0xff]  ;;  %v575_v45 = vld [vmem:[#allocation2 + $0xef0] sm:$0xff] }
  0x32   :  { %773 = vmatpush.msrb.mxu1 %v377_v4  ;;  %814 = vmatpush.msrb.mxu3 %v656_v5  ;;  %v161_v39 = vld [vmem:[#allocation2 + $0x200] sm:$0xff]  ;;  %v296_v44 = vld [vmem:[#allocation2 + $0x638] sm:$0xff]  ;;  %v422_v46 = vld [vmem:[#allocation2 + $0xa28] sm:$0xff] }
  0x33   :  { %795 = vmatpush.msrb.mxu2 %v503_v6  ;;  %754 = vmatpush.msrb.mxu0 %v224_v7  ;;  %v305_v40 = vld [vmem:[#allocation2 + $0x680] sm:$0xff]  ;;  %v143_v47 = vld [vmem:[#allocation2 + $0x170] sm:$0xff]  ;;  %v566_v51 = vld [vmem:[#allocation2 + $0xea8] sm:$0xff] }
  0x34   :  { %774 = vmatpush.msrb.mxu1 %v368_v8  ;;  %815 = vmatpush.msrb.mxu3 %v647_v9  ;;  %v287_v49 = vld [vmem:[#allocation2 + $0x5f0] sm:$0xff]  ;;  %v413_v50 = vld [vmem:[#allocation2 + $0x9e0] sm:$0xff]  ;;  %v134_v53 = vld [vmem:[#allocation2 + $0x128] sm:$0xff] }
  0x35   :  { %796 = vmatpush.msrb.mxu2 %v494_v10  ;;  %755 = vmatpush.msrb.mxu0 %v215_v11  ;;  %v278_v54 = vld [vmem:[#allocation2 + $0x5a8] sm:$0xff]  ;;  %v404_v55 = vld [vmem:[#allocation2 + $0x998] sm:$0xff]  ;;  %v557_v56 = vld [vmem:[#allocation2 + $0xe60] sm:$0xff] }
  0x36   :  { %775 = vmatpush.msrb.mxu1 %v359_v13  ;;  %816 = vmatpush.msrb.mxu3 %v638_v14  ;;  %v125_v57 = vld [vmem:[#allocation2 + $0xe0] sm:$0xff]  ;;  %v395_v59 = vld [vmem:[#allocation2 + $0x950] sm:$0xff]  ;;  %v548_v60 = vld [vmem:[#allocation2 + $0xe18] sm:$0xff] }
  0x37   :  { %797 = vmatpush.msrb.mxu2 %v485_v15  ;;  %756 = vmatpush.msrb.mxu0 %v206_v16  ;;  %v2234_v48 = vld.sshfl [vmem:[#allocation1] sm:$0xff pattern:$0x75316420]  ;;  %v2236_v52 = vld.sshfl [vmem:[#allocation1 + $0x8] sm:$0xff pattern:$0x75316420] }
  0x38   :  { %776 = vmatpush.msrb.mxu1 %v350_v17  ;;  %817 = vmatpush.msrb.mxu3 %v629_v18  ;;  %v269_v58 = vld [vmem:[#allocation2 + $0x560] sm:$0xff]  ;;  %v116_v61 = vld [vmem:[#allocation2 + $0x98] sm:$0xff]  ;;  %v386_v63 = vld [vmem:[#allocation2 + $0x908] sm:$0xff] }
  0x39   :  { %798 = vmatpush.msrb.mxu2 %v476_v19  ;;  %757 = vmatpush.msrb.mxu0 %v197_v20  ;;  %v260_v62 = vld [vmem:[#allocation2 + $0x518] sm:$0xff]  ;;  %v539_v0 = vld [vmem:[#allocation2 + $0xdd0] sm:$0xff]  ;;  %v522_v1 = vld [vmem:[#allocation2 + $0xd48] sm:$0xff] }
  0x3a   :  { %777 = vmatpush.msrb.mxu1 %v341_v21  ;;  %818 = vmatpush.msrb.mxu3 %v620_v23  ;;  %v107_v2 = vld [vmem:[#allocation2 + $0x50] sm:$0xff]  ;;  %v530_v4 = vld [vmem:[#allocation2 + $0xd88] sm:$0xff]  ;;  %v513_v5 = vld [vmem:[#allocation2 + $0xd00] sm:$0xff] }
  0x3b   :  { %799 = vmatpush.msrb.mxu2 %v467_v22  ;;  %758 = vmatpush.msrb.mxu0 %v188_v24  ;;  %v251_v3 = vld [vmem:[#allocation2 + $0x4d0] sm:$0xff]  ;;  %v666_v6 = vld [vmem:[#allocation2 + $0x11c8] sm:$0xff]  ;;  %v504_v11 = vld [vmem:[#allocation2 + $0xcb8] sm:$0xff] }
  0x3c   :  { %778 = vmatpush.msrb.mxu1 %v332_v25  ;;  %819 = vmatpush.msrb.mxu3 %v611_v28  ;;  %v98_v7 = vld [vmem:[#allocation2 + $0x8] sm:$0xff]  ;;  %v657_v12 = vld [vmem:[#allocation2 + $0x1180] sm:$0xff]  ;;  %v495_v15 = vld [vmem:[#allocation2 + $0xc70] sm:$0xff] }
  0x3d   :  { %800 = vmatpush.msrb.mxu2 %v458_v27  ;;  %759 = vmatpush.msrb.mxu0 %v179_v29  ;;  %v242_v8 = vld [vmem:[#allocation2 + $0x488] sm:$0xff]  ;;  %v225_v13 = vld [vmem:[#allocation2 + $0x400] sm:$0xff]  ;;  %v648_v16 = vld [vmem:[#allocation2 + $0x1138] sm:$0xff] }
  0x3e   :  { %779 = vmatpush.msrb.mxu1 %v323_v32  ;;  %820 = vmatpush.msrb.mxu3 %v602_v33  ;;  %v234_v9 = vld [vmem:[#allocation2 + $0x448] sm:$0xff]  ;;  %v369_v14 = vld [vmem:[#allocation2 + $0x880] sm:$0xff]  ;;  %v216_v17 = vld [vmem:[#allocation2 + $0x3b8] sm:$0xff] }
  0x3f   :  { %801 = vmatpush.msrb.mxu2 %v449_v34  ;;  %760 = vmatpush.msrb.mxu0 %v170_v35  ;;  %v378_v10 = vld [vmem:[#allocation2 + $0x8c8] sm:$0xff]  ;;  %v360_v18 = vld [vmem:[#allocation2 + $0x838] sm:$0xff]  ;;  %v639_v20 = vld [vmem:[#allocation2 + $0x10f0] sm:$0xff] }
  0x40   :  { %780 = vmatpush.msrb.mxu1 %v314_v36  ;;  %821 = vmatpush.msrb.mxu3 %v593_v37  ;;  %v486_v19 = vld [vmem:[#allocation2 + $0xc28] sm:$0xff]  ;;  %v207_v21 = vld [vmem:[#allocation2 + $0x370] sm:$0xff]  ;;  %v477_v23 = vld [vmem:[#allocation2 + $0xbe0] sm:$0xff] }
  0x41   :  { %802 = vmatpush.msrb.mxu2 %v440_v38  ;;  %761 = vmatpush.msrb.mxu0 %v161_v39  ;;  %v351_v22 = vld [vmem:[#allocation2 + $0x7f0] sm:$0xff]  ;;  %v630_v24 = vld [vmem:[#allocation2 + $0x10a8] sm:$0xff]  ;;  %v468_v27 = vld [vmem:[#allocation2 + $0xb98] sm:$0xff] }
  0x42   :  { %781 = vmatpush.msrb.mxu1 %v305_v40  ;;  %822 = vmatpush.msrb.mxu3 %v584_v41  ;;  %v198_v25 = vld [vmem:[#allocation2 + $0x328] sm:$0xff]  ;;  %v621_v28 = vld [vmem:[#allocation2 + $0x1060] sm:$0xff]  ;;  %v459_v33 = vld [vmem:[#allocation2 + $0xb50] sm:$0xff] }
  0x43   :  { %803 = vmatpush.msrb.mxu2 %v431_v42  ;;  %762 = vmatpush.msrb.mxu0 %v152_v43  ;;  %v342_v26 = vld [vmem:[#allocation2 + $0x7a8] sm:$0xff]  ;;  %v189_v29 = vld [vmem:[#allocation2 + $0x2e0] sm:$0xff]  ;;  %v612_v34 = vld [vmem:[#allocation2 + $0x1018] sm:$0xff] }
  0x44   :  { %782 = vmatpush.msrb.mxu1 %v296_v44  ;;  %823 = vmatpush.msrb.mxu3 %v575_v45  ;;  %v333_v32 = vld [vmem:[#allocation2 + $0x760] sm:$0xff]  ;;  %v180_v35 = vld [vmem:[#allocation2 + $0x298] sm:$0xff]  ;;  %v450_v37 = vld [vmem:[#allocation2 + $0xb08] sm:$0xff] }
  0x45   :  { %804 = vmatpush.msrb.mxu2 %v422_v46  ;;  %763 = vmatpush.msrb.mxu0 %v143_v47  ;;  %v324_v36 = vld [vmem:[#allocation2 + $0x718] sm:$0xff]  ;;  %v603_v38 = vld [vmem:[#allocation2 + $0xfd0] sm:$0xff]  ;;  %v441_v41 = vld [vmem:[#allocation2 + $0xac0] sm:$0xff] }
  0x46   :  { %729 = vmatmul.f32.vlgmr.msra.gmra.mxu2 %v2234_v48  ;;  %783 = vmatpush.msrb.mxu1 %v287_v49  ;;  %v171_v39 = vld [vmem:[#allocation2 + $0x250] sm:$0xff]  ;;  %v594_v42 = vld [vmem:[#allocation2 + $0xf88] sm:$0xff]  ;;  %v432_v45 = vld [vmem:[#allocation2 + $0xa78] sm:$0xff] }
  0x47   :  { %805 = vmatpush.msrb.mxu2 %v413_v50  ;;  %824 = vmatpush.msrb.mxu3 %v566_v51  ;;  %v315_v40 = vld [vmem:[#allocation2 + $0x6d0] sm:$0xff]  ;;  %v162_v43 = vld [vmem:[#allocation2 + $0x208] sm:$0xff]  ;;  %v585_v46 = vld [vmem:[#allocation2 + $0xf40] sm:$0xff] }
  0x48   :  { %749 = vmatmul.f32.vlgmr.msra.gmra.mxu3 %v2236_v52  ;;  %764 = vmatpush.msrb.mxu0 %v134_v53  ;;  %v306_v44 = vld [vmem:[#allocation2 + $0x688] sm:$0xff]  ;;  %v153_v47 = vld [vmem:[#allocation2 + $0x1c0] sm:$0xff]  ;;  %v423_v50 = vld [vmem:[#allocation2 + $0xa30] sm:$0xff] }
  0x49   :  { %784 = vmatpush.msrb.mxu1 %v278_v54  ;;  %806 = vmatpush.msrb.mxu2 %v404_v55  ;;  %v297_v49 = vld [vmem:[#allocation2 + $0x640] sm:$0xff]  ;;  %v576_v51 = vld [vmem:[#allocation2 + $0xef8] sm:$0xff]  ;;  %v414_v55 = vld [vmem:[#allocation2 + $0x9e8] sm:$0xff] }
  0x4a   :  { %825 = vmatpush.msrb.mxu3 %v557_v56  ;;  %689 = vmatmul.f32.vlgmr.msra.gmra.mxu0 %v2230_v30  ;;  %v144_v53 = vld [vmem:[#allocation2 + $0x178] sm:$0xff]  ;;  %v567_v56 = vld [vmem:[#allocation2 + $0xeb0] sm:$0xff] }
  0x4b   :  { %709 = vmatmul.f32.vlgmr.msra.gmra.mxu1 %v2232_v31  ;;  %765 = vmatpush.msrb.mxu0 %v125_v57  ;;  %v288_v54 = vld [vmem:[#allocation2 + $0x5f8] sm:$0xff]  ;;  %v135_v57 = vld [vmem:[#allocation2 + $0x130] sm:$0xff] }
  0x4c   :  { %785 = vmatpush.msrb.mxu1 %v269_v58  ;;  %807 = vmatpush.msrb.mxu2 %v395_v59  ;;  %v279_v58 = vld [vmem:[#allocation2 + $0x5b0] sm:$0xff]  ;;  %v405_v59 = vld [vmem:[#allocation2 + $0x9a0] sm:$0xff] }
  0x4d   :  { %826 = vmatpush.msrb.mxu3 %v548_v60  ;;  %766 = vmatpush.msrb.mxu0 %v116_v61  ;;  %v558_v60 = vld [vmem:[#allocation2 + $0xe68] sm:$0xff] }
  0x4e   :  { %786 = vmatpush.msrb.mxu1 %v260_v62  ;;  %808 = vmatpush.msrb.mxu2 %v386_v63  ;;  %v126_v61 = vld [vmem:[#allocation2 + $0xe8] sm:$0xff]  ;;  %v396_v63 = vld [vmem:[#allocation2 + $0x958] sm:$0xff] }
  0x4f   :  { %827 = vmatpush.msrb.mxu3 %v539_v0  ;;  %809 = vmatmul.f32.vlgmr.msrb.gmra.mxu2 %v2234_v48  ;;  %v270_v62 = vld [vmem:[#allocation2 + $0x568] sm:$0xff]  ;;  %v549_v0 = vld [vmem:[#allocation2 + $0xe20] sm:$0xff] }
  0x50   :  { %873 = vmatpush.msra.mxu2 %v522_v1  ;;  %767 = vmatpush.msrb.mxu0 %v107_v2  ;;  %v117_v1 = vld [vmem:[#allocation2 + $0xa0] sm:$0xff] }
  0x51   :  { %787 = vmatpush.msrb.mxu1 %v251_v3  ;;  %828 = vmatpush.msrb.mxu3 %v530_v4  ;;  %v261_v2 = vld [vmem:[#allocation2 + $0x520] sm:$0xff]  ;;  %v387_v3 = vld [vmem:[#allocation2 + $0x910] sm:$0xff]  ;;  %v540_v4 = vld [vmem:[#allocation2 + $0xdd8] sm:$0xff] }
  0x52   :  { %829 = vmatmul.f32.vlgmr.msrb.gmra.mxu3 %v2236_v52  ;;  %874 = vmatpush.msra.mxu2 %v513_v5  ;;  %v523_v5 = vld [vmem:[#allocation2 + $0xd50] sm:$0xff] }
  0x53   :  { %893 = vmatpush.msra.mxu3 %v666_v6  ;;  %768 = vmatpush.msrb.mxu0 %v98_v7  ;;  %v108_v6 = vld [vmem:[#allocation2 + $0x58] sm:$0xff] }
  0x54   :  { %788 = vmatpush.msrb.mxu1 %v242_v8  ;;  %769 = vmatmul.f32.vlgmr.msrb.gmra.mxu0 %v2230_v30  ;;  %v252_v7 = vld [vmem:[#allocation2 + $0x4d8] sm:$0xff]  ;;  %v531_v8 = vld [vmem:[#allocation2 + $0xd90] sm:$0xff] }
  0x55   :  { %789 = vmatmul.f32.vlgmr.msrb.gmra.mxu1 %v2232_v31  ;;  %833 = vmatpush.msra.mxu0 %v234_v9  ;;  %v514_v9 = vld [vmem:[#allocation2 + $0xd08] sm:$0xff] }
  0x56   :  { %853 = vmatpush.msra.mxu1 %v378_v10  ;;  %875 = vmatpush.msra.mxu2 %v504_v11  ;;  %v667_v10 = vld [vmem:[#allocation2 + $0x11d0] sm:$0xff] }
  0x57   :  { %894 = vmatpush.msra.mxu3 %v657_v12  ;;  %834 = vmatpush.msra.mxu0 %v225_v13  ;;  %v99_v11 = vld [vmem:[#allocation2 + $0x10] sm:$0xff] }
  0x58   :  { %854 = vmatpush.msra.mxu1 %v369_v14  ;;  %876 = vmatpush.msra.mxu2 %v495_v15  ;;  %v243_v12 = vld [vmem:[#allocation2 + $0x490] sm:$0xff]  ;;  %v505_v15 = vld [vmem:[#allocation2 + $0xcc0] sm:$0xff] }
  0x59   :  { %895 = vmatpush.msra.mxu3 %v648_v16  ;;  %835 = vmatpush.msra.mxu0 %v216_v17  ;;  %v235_v13 = vld [vmem:[#allocation2 + $0x450] sm:$0xff]  ;;  %v658_v16 = vld [vmem:[#allocation2 + $0x1188] sm:$0xff] }
  0x5a   :  { %855 = vmatpush.msra.mxu1 %v360_v18  ;;  %877 = vmatpush.msra.mxu2 %v486_v19  ;;  %v379_v14 = vld [vmem:[#allocation2 + $0x8d0] sm:$0xff]  ;;  %v226_v17 = vld [vmem:[#allocation2 + $0x408] sm:$0xff]  ;;  %v496_v19 = vld [vmem:[#allocation2 + $0xc78] sm:$0xff] }
  0x5b   :  { %896 = vmatpush.msra.mxu3 %v639_v20  ;;  %836 = vmatpush.msra.mxu0 %v207_v21  ;;  %v370_v18 = vld [vmem:[#allocation2 + $0x888] sm:$0xff]  ;;  %v649_v20 = vld [vmem:[#allocation2 + $0x1140] sm:$0xff] }
  0x5c   :  { %856 = vmatpush.msra.mxu1 %v351_v22  ;;  %878 = vmatpush.msra.mxu2 %v477_v23  ;;  %v217_v21 = vld [vmem:[#allocation2 + $0x3c0] sm:$0xff]  ;;  %v487_v23 = vld [vmem:[#allocation2 + $0xc30] sm:$0xff] }
  0x5d   :  { %897 = vmatpush.msra.mxu3 %v630_v24  ;;  %837 = vmatpush.msra.mxu0 %v198_v25  ;;  %v361_v22 = vld [vmem:[#allocation2 + $0x840] sm:$0xff]  ;;  %v640_v24 = vld [vmem:[#allocation2 + $0x10f8] sm:$0xff] }
  0x5e   :  { %857 = vmatpush.msra.mxu1 %v342_v26  ;;  %879 = vmatpush.msra.mxu2 %v468_v27  ;;  %v208_v25 = vld [vmem:[#allocation2 + $0x378] sm:$0xff]  ;;  %v478_v27 = vld [vmem:[#allocation2 + $0xbe8] sm:$0xff] }
  0x5f   :  { %898 = vmatpush.msra.mxu3 %v621_v28  ;;  %838 = vmatpush.msra.mxu0 %v189_v29  ;;  %v352_v26 = vld [vmem:[#allocation2 + $0x7f8] sm:$0xff]  ;;  %v631_v28 = vld [vmem:[#allocation2 + $0x10b0] sm:$0xff] }
  0x60   :  { %858 = vmatpush.msra.mxu1 %v333_v32  ;;  %880 = vmatpush.msra.mxu2 %v459_v33  ;;  %v199_v29 = vld [vmem:[#allocation2 + $0x330] sm:$0xff]  ;;  %v469_v33 = vld [vmem:[#allocation2 + $0xba0] sm:$0xff] }
  0x61   :  { %899 = vmatpush.msra.mxu3 %v612_v34  ;;  %839 = vmatpush.msra.mxu0 %v180_v35  ;;  %v343_v32 = vld [vmem:[#allocation2 + $0x7b0] sm:$0xff]  ;;  %v622_v34 = vld [vmem:[#allocation2 + $0x1068] sm:$0xff] }
  0x62   :  { %859 = vmatpush.msra.mxu1 %v324_v36  ;;  %881 = vmatpush.msra.mxu2 %v450_v37  ;;  %v190_v35 = vld [vmem:[#allocation2 + $0x2e8] sm:$0xff]  ;;  %v460_v37 = vld [vmem:[#allocation2 + $0xb58] sm:$0xff] }
  0x63   :  { %900 = vmatpush.msra.mxu3 %v603_v38  ;;  %840 = vmatpush.msra.mxu0 %v171_v39  ;;  %v334_v36 = vld [vmem:[#allocation2 + $0x768] sm:$0xff]  ;;  %v613_v38 = vld [vmem:[#allocation2 + $0x1020] sm:$0xff] }
  0x64   :  { %860 = vmatpush.msra.mxu1 %v315_v40  ;;  %882 = vmatpush.msra.mxu2 %v441_v41  ;;  %v181_v39 = vld [vmem:[#allocation2 + $0x2a0] sm:$0xff]  ;;  %v451_v41 = vld [vmem:[#allocation2 + $0xb10] sm:$0xff] }
  0x65   :  { %901 = vmatpush.msra.mxu3 %v594_v42  ;;  %841 = vmatpush.msra.mxu0 %v162_v43  ;;  %v325_v40 = vld [vmem:[#allocation2 + $0x720] sm:$0xff]  ;;  %v604_v42 = vld [vmem:[#allocation2 + $0xfd8] sm:$0xff] }
  0x66   :  { %861 = vmatpush.msra.mxu1 %v306_v44  ;;  %883 = vmatpush.msra.mxu2 %v432_v45  ;;  %v172_v43 = vld [vmem:[#allocation2 + $0x258] sm:$0xff]  ;;  %v442_v45 = vld [vmem:[#allocation2 + $0xac8] sm:$0xff] }
  0x67   :  { %902 = vmatpush.msra.mxu3 %v585_v46  ;;  %842 = vmatpush.msra.mxu0 %v153_v47  ;;  %v316_v44 = vld [vmem:[#allocation2 + $0x6d8] sm:$0xff]  ;;  %v595_v46 = vld [vmem:[#allocation2 + $0xf90] sm:$0xff] }
  0x68   :  { %862 = vmatpush.msra.mxu1 %v297_v49  ;;  %884 = vmatpush.msra.mxu2 %v423_v50  ;;  %v163_v47 = vld [vmem:[#allocation2 + $0x210] sm:$0xff]  ;;  %v433_v50 = vld [vmem:[#allocation2 + $0xa80] sm:$0xff] }
  0x69   :  { %903 = vmatpush.msra.mxu3 %v576_v51  ;;  %843 = vmatpush.msra.mxu0 %v144_v53  ;;  %v307_v49 = vld [vmem:[#allocation2 + $0x690] sm:$0xff]  ;;  %v586_v51 = vld [vmem:[#allocation2 + $0xf48] sm:$0xff] }
  0x6a   :  { %863 = vmatpush.msra.mxu1 %v288_v54  ;;  %885 = vmatpush.msra.mxu2 %v414_v55  ;;  %v154_v53 = vld [vmem:[#allocation2 + $0x1c8] sm:$0xff]  ;;  %v424_v55 = vld [vmem:[#allocation2 + $0xa38] sm:$0xff] }
  0x6b   :  { %904 = vmatpush.msra.mxu3 %v567_v56  ;;  %844 = vmatpush.msra.mxu0 %v135_v57  ;;  %v298_v54 = vld [vmem:[#allocation2 + $0x648] sm:$0xff]  ;;  %v577_v56 = vld [vmem:[#allocation2 + $0xf00] sm:$0xff] }
  0x6c   :  { %864 = vmatpush.msra.mxu1 %v279_v58  ;;  %886 = vmatpush.msra.mxu2 %v405_v59  ;;  %v145_v57 = vld [vmem:[#allocation2 + $0x180] sm:$0xff]  ;;  %v415_v59 = vld [vmem:[#allocation2 + $0x9f0] sm:$0xff] }
  0x6d   :  { %905 = vmatpush.msra.mxu3 %v558_v60  ;;  %845 = vmatpush.msra.mxu0 %v126_v61  ;;  %v289_v58 = vld [vmem:[#allocation2 + $0x600] sm:$0xff]  ;;  %v568_v60 = vld [vmem:[#allocation2 + $0xeb8] sm:$0xff] }
  0x6e   :  { %865 = vmatpush.msra.mxu1 %v270_v62  ;;  %887 = vmatpush.msra.mxu2 %v396_v63  ;;  %v136_v61 = vld [vmem:[#allocation2 + $0x138] sm:$0xff]  ;;  %v406_v63 = vld [vmem:[#allocation2 + $0x9a8] sm:$0xff] }
  0x6f   :  { %906 = vmatpush.msra.mxu3 %v549_v0  ;;  %846 = vmatpush.msra.mxu0 %v117_v1  ;;  %v280_v62 = vld [vmem:[#allocation2 + $0x5b8] sm:$0xff]  ;;  %v559_v0 = vld [vmem:[#allocation2 + $0xe70] sm:$0xff] }
  0x70   :  { %866 = vmatpush.msra.mxu1 %v261_v2  ;;  %888 = vmatpush.msra.mxu2 %v387_v3  ;;  %v127_v1 = vld [vmem:[#allocation2 + $0xf0] sm:$0xff]  ;;  %v397_v3 = vld [vmem:[#allocation2 + $0x960] sm:$0xff] }
  0x71   :  { %907 = vmatpush.msra.mxu3 %v540_v4  ;;  %847 = vmatpush.msra.mxu0 %v108_v6  ;;  %v271_v2 = vld [vmem:[#allocation2 + $0x570] sm:$0xff]  ;;  %v550_v4 = vld [vmem:[#allocation2 + $0xe28] sm:$0xff] }
  0x72   :  { %953 = vmatpush.msrb.mxu2 %v523_v5  ;;  %867 = vmatpush.msra.mxu1 %v252_v7  ;;  %v118_v5 = vld [vmem:[#allocation2 + $0xa8] sm:$0xff]  ;;  %v388_v7 = vld [vmem:[#allocation2 + $0x918] sm:$0xff] }
  0x73   :  { %908 = vmatpush.msra.mxu3 %v531_v8  ;;  %848 = vmatpush.msra.mxu0 %v99_v11  ;;  %v262_v6 = vld [vmem:[#allocation2 + $0x528] sm:$0xff]  ;;  %v541_v8 = vld [vmem:[#allocation2 + $0xde0] sm:$0xff] }
  0x74   :  { %954 = vmatpush.msrb.mxu2 %v514_v9  ;;  %868 = vmatpush.msra.mxu1 %v243_v12  ;;  %v524_v9 = vld [vmem:[#allocation2 + $0xd58] sm:$0xff]  ;;  %v253_v11 = vld [vmem:[#allocation2 + $0x4e0] sm:$0xff] }
  0x75   :  { %973 = vmatpush.msrb.mxu3 %v667_v10  ;;  %913 = vmatpush.msrb.mxu0 %v235_v13  ;;  %v109_v10 = vld [vmem:[#allocation2 + $0x60] sm:$0xff]  ;;  %v532_v12 = vld [vmem:[#allocation2 + $0xd98] sm:$0xff]  ;;  %v515_v13 = vld [vmem:[#allocation2 + $0xd10] sm:$0xff] }
  0x76   :  { %933 = vmatpush.msrb.mxu1 %v379_v14  ;;  %955 = vmatpush.msrb.mxu2 %v505_v15  ;;  %v668_v14 = vld [vmem:[#allocation2 + $0x11d8] sm:$0xff] }
  0x77   :  { %974 = vmatpush.msrb.mxu3 %v658_v16  ;;  %914 = vmatpush.msrb.mxu0 %v226_v17  ;;  %v100_v15 = vld [vmem:[#allocation2 + $0x18] sm:$0xff] }
  0x78   :  { %934 = vmatpush.msrb.mxu1 %v370_v18  ;;  %956 = vmatpush.msrb.mxu2 %v496_v19  ;;  %v244_v16 = vld [vmem:[#allocation2 + $0x498] sm:$0xff]  ;;  %v506_v19 = vld [vmem:[#allocation2 + $0xcc8] sm:$0xff] }
  0x79   :  { %975 = vmatpush.msrb.mxu3 %v649_v20  ;;  %915 = vmatpush.msrb.mxu0 %v217_v21  ;;  %v236_v17 = vld [vmem:[#allocation2 + $0x458] sm:$0xff]  ;;  %v227_v20 = vld [vmem:[#allocation2 + $0x410] sm:$0xff] }
  0x7a   :  { %935 = vmatpush.msrb.mxu1 %v361_v22  ;;  %957 = vmatpush.msrb.mxu2 %v487_v23  ;;  %v380_v18 = vld [vmem:[#allocation2 + $0x8d8] sm:$0xff]  ;;  %v371_v21 = vld [vmem:[#allocation2 + $0x890] sm:$0xff]  ;;  %v497_v22 = vld [vmem:[#allocation2 + $0xc80] sm:$0xff] }
  0x7b   :  { %976 = vmatpush.msrb.mxu3 %v640_v24  ;;  %916 = vmatpush.msrb.mxu0 %v208_v25  ;;  %v650_v23 = vld [vmem:[#allocation2 + $0x1148] sm:$0xff]  ;;  %v488_v25 = vld [vmem:[#allocation2 + $0xc38] sm:$0xff] }
  0x7c   :  { %936 = vmatpush.msrb.mxu1 %v352_v26  ;;  %958 = vmatpush.msrb.mxu2 %v478_v27  ;;  %v362_v24 = vld [vmem:[#allocation2 + $0x848] sm:$0xff]  ;;  %v641_v26 = vld [vmem:[#allocation2 + $0x1100] sm:$0xff] }
  0x7d   :  { %977 = vmatpush.msrb.mxu3 %v631_v28  ;;  %917 = vmatpush.msrb.mxu0 %v199_v29  ;;  %v209_v27 = vld [vmem:[#allocation2 + $0x380] sm:$0xff]  ;;  %v479_v29 = vld [vmem:[#allocation2 + $0xbf0] sm:$0xff] }
  0x7e   :  { %937 = vmatpush.msrb.mxu1 %v343_v32  ;;  %959 = vmatpush.msrb.mxu2 %v469_v33  ;;  %v353_v28 = vld [vmem:[#allocation2 + $0x800] sm:$0xff]  ;;  %v632_v32 = vld [vmem:[#allocation2 + $0x10b8] sm:$0xff] }
  0x7f   :  { %978 = vmatpush.msrb.mxu3 %v622_v34  ;;  %918 = vmatpush.msrb.mxu0 %v190_v35  ;;  %v200_v33 = vld [vmem:[#allocation2 + $0x338] sm:$0xff]  ;;  %v470_v35 = vld [vmem:[#allocation2 + $0xba8] sm:$0xff] }
  0x80   :  { %938 = vmatpush.msrb.mxu1 %v334_v36  ;;  %960 = vmatpush.msrb.mxu2 %v460_v37  ;;  %v344_v34 = vld [vmem:[#allocation2 + $0x7b8] sm:$0xff]  ;;  %v623_v36 = vld [vmem:[#allocation2 + $0x1070] sm:$0xff] }
  0x81   :  { %979 = vmatpush.msrb.mxu3 %v613_v38  ;;  %919 = vmatpush.msrb.mxu0 %v181_v39  ;;  %v191_v37 = vld [vmem:[#allocation2 + $0x2f0] sm:$0xff]  ;;  %v461_v39 = vld [vmem:[#allocation2 + $0xb60] sm:$0xff] }
  0x82   :  { %939 = vmatpush.msrb.mxu1 %v325_v40  ;;  %961 = vmatpush.msrb.mxu2 %v451_v41  ;;  %v335_v38 = vld [vmem:[#allocation2 + $0x770] sm:$0xff]  ;;  %v614_v40 = vld [vmem:[#allocation2 + $0x1028] sm:$0xff] }
  0x83   :  { %980 = vmatpush.msrb.mxu3 %v604_v42  ;;  %920 = vmatpush.msrb.mxu0 %v172_v43  ;;  %v182_v41 = vld [vmem:[#allocation2 + $0x2a8] sm:$0xff]  ;;  %v452_v43 = vld [vmem:[#allocation2 + $0xb18] sm:$0xff] }
  0x84   :  { %940 = vmatpush.msrb.mxu1 %v316_v44  ;;  %962 = vmatpush.msrb.mxu2 %v442_v45  ;;  %v326_v42 = vld [vmem:[#allocation2 + $0x728] sm:$0xff]  ;;  %v605_v44 = vld [vmem:[#allocation2 + $0xfe0] sm:$0xff] }
  0x85   :  { %981 = vmatpush.msrb.mxu3 %v595_v46  ;;  %921 = vmatpush.msrb.mxu0 %v163_v47  ;;  %v173_v45 = vld [vmem:[#allocation2 + $0x260] sm:$0xff]  ;;  %v443_v47 = vld [vmem:[#allocation2 + $0xad0] sm:$0xff] }
  0x86   :  { %941 = vmatpush.msrb.mxu1 %v307_v49  ;;  %963 = vmatpush.msrb.mxu2 %v433_v50  ;;  %v317_v46 = vld [vmem:[#allocation2 + $0x6e0] sm:$0xff]  ;;  %v596_v49 = vld [vmem:[#allocation2 + $0xf98] sm:$0xff] }
  0x87   :  { %982 = vmatpush.msrb.mxu3 %v586_v51  ;;  %922 = vmatpush.msrb.mxu0 %v154_v53  ;;  %v164_v50 = vld [vmem:[#allocation2 + $0x218] sm:$0xff]  ;;  %v434_v53 = vld [vmem:[#allocation2 + $0xa88] sm:$0xff] }
  0x88   :  { %942 = vmatpush.msrb.mxu1 %v298_v54  ;;  %964 = vmatpush.msrb.mxu2 %v424_v55  ;;  %v308_v51 = vld [vmem:[#allocation2 + $0x698] sm:$0xff]  ;;  %v587_v54 = vld [vmem:[#allocation2 + $0xf50] sm:$0xff] }
  0x89   :  { %983 = vmatpush.msrb.mxu3 %v577_v56  ;;  %889 = vmatmul.f32.vlgmr.msra.gmra.mxu2 %v2234_v48  ;;  %v155_v55 = vld [vmem:[#allocation2 + $0x1d0] sm:$0xff] }
  0x8a   :  { %923 = vmatpush.msrb.mxu0 %v145_v57  ;;  %943 = vmatpush.msrb.mxu1 %v289_v58  ;;  %v299_v56 = vld [vmem:[#allocation2 + $0x650] sm:$0xff]  ;;  %v425_v57 = vld [vmem:[#allocation2 + $0xa40] sm:$0xff]  ;;  %v578_v58 = vld [vmem:[#allocation2 + $0xf08] sm:$0xff] }
  0x8b   :  { %965 = vmatpush.msrb.mxu2 %v415_v59  ;;  %984 = vmatpush.msrb.mxu3 %v568_v60  ;;  %v146_v59 = vld [vmem:[#allocation2 + $0x188] sm:$0xff] }
  0x8c   :  { %909 = vmatmul.f32.vlgmr.msra.gmra.mxu3 %v2236_v52  ;;  %924 = vmatpush.msrb.mxu0 %v136_v61  ;;  %v290_v60 = vld [vmem:[#allocation2 + $0x608] sm:$0xff]  ;;  %v416_v61 = vld [vmem:[#allocation2 + $0x9f8] sm:$0xff] }
  0x8d   :  { %944 = vmatpush.msrb.mxu1 %v280_v62  ;;  %966 = vmatpush.msrb.mxu2 %v406_v63  ;;  %v569_v62 = vld [vmem:[#allocation2 + $0xec0] sm:$0xff] }
  0x8e   :  { %985 = vmatpush.msrb.mxu3 %v559_v0  ;;  %849 = vmatmul.f32.vlgmr.msra.gmra.mxu0 %v2230_v30  ;;  %v137_v63 = vld [vmem:[#allocation2 + $0x140] sm:$0xff] }
  0x8f   :  { %869 = vmatmul.f32.vlgmr.msra.gmra.mxu1 %v2232_v31  ;;  %925 = vmatpush.msrb.mxu0 %v127_v1  ;;  %v281_v0 = vld [vmem:[#allocation2 + $0x5c0] sm:$0xff]  ;;  %v407_v1 = vld [vmem:[#allocation2 + $0x9b0] sm:$0xff] }
  0x90   :  { %945 = vmatpush.msrb.mxu1 %v271_v2  ;;  %967 = vmatpush.msrb.mxu2 %v397_v3  ;;  %v560_v2 = vld [vmem:[#allocation2 + $0xe78] sm:$0xff] }
  0x91   :  { %986 = vmatpush.msrb.mxu3 %v550_v4  ;;  %926 = vmatpush.msrb.mxu0 %v118_v5  ;;  %v128_v3 = vld [vmem:[#allocation2 + $0xf8] sm:$0xff]  ;;  %v398_v5 = vld [vmem:[#allocation2 + $0x968] sm:$0xff] }
  0x92   :  { %946 = vmatpush.msrb.mxu1 %v262_v6  ;;  %968 = vmatpush.msrb.mxu2 %v388_v7  ;;  %v272_v4 = vld [vmem:[#allocation2 + $0x578] sm:$0xff]  ;;  %v551_v6 = vld [vmem:[#allocation2 + $0xe30] sm:$0xff] }
  0x93   :  { %987 = vmatpush.msrb.mxu3 %v541_v8  ;;  %969 = vmatmul.f32.vlgmr.msrb.gmra.mxu2 %v2234_v48  ;;  %v659_v48 = vld [vmem:[#allocation2 + $0x1190] sm:$0xff] }
  0x94   :  { %1033 = vmatpush.msra.mxu2 %v524_v9  ;;  %927 = vmatpush.msrb.mxu0 %v109_v10  ;;  %v119_v7 = vld [vmem:[#allocation2 + $0xb0] sm:$0xff]  ;;  %v389_v9 = vld [vmem:[#allocation2 + $0x920] sm:$0xff]  ;;  %v542_v10 = vld [vmem:[#allocation2 + $0xde8] sm:$0xff] }
  0x95   :  { %947 = vmatpush.msrb.mxu1 %v253_v11  ;;  %988 = vmatpush.msrb.mxu3 %v532_v12  ;;  %v263_v8 = vld [vmem:[#allocation2 + $0x530] sm:$0xff]  ;;  %v525_v11 = vld [vmem:[#allocation2 + $0xd60] sm:$0xff]  ;;  %v110_v12 = vld [vmem:[#allocation2 + $0x68] sm:$0xff] }
  0x96   :  { %989 = vmatmul.f32.vlgmr.msrb.gmra.mxu3 %v2236_v52  ;;  %1034 = vmatpush.msra.mxu2 %v515_v13  ;;  %v218_v52 = vld [vmem:[#allocation2 + $0x3c8] sm:$0xff] }
  0x97   :  { %1053 = vmatpush.msra.mxu3 %v668_v14  ;;  %928 = vmatpush.msrb.mxu0 %v100_v15  ;;  %v254_v13 = vld [vmem:[#allocation2 + $0x4e8] sm:$0xff]  ;;  %v533_v14 = vld [vmem:[#allocation2 + $0xda0] sm:$0xff]  ;;  %v516_v15 = vld [vmem:[#allocation2 + $0xd18] sm:$0xff] }
  0x98   :  { %948 = vmatpush.msrb.mxu1 %v244_v16  ;;  %929 = vmatmul.f32.vlgmr.msrb.gmra.mxu0 %v2230_v30  ;;  %v669_v16 = vld [vmem:[#allocation2 + $0x11e0] sm:$0xff] }
  0x99   :  { %949 = vmatmul.f32.vlgmr.msrb.gmra.mxu1 %v2232_v31  ;;  %993 = vmatpush.msra.mxu0 %v236_v17  ;;  %v101_v17 = vld [vmem:[#allocation2 + $0x20] sm:$0xff] }
  0x9a   :  { %1013 = vmatpush.msra.mxu1 %v380_v18  ;;  %1035 = vmatpush.msra.mxu2 %v506_v19  ;;  %v245_v18 = vld [vmem:[#allocation2 + $0x4a0] sm:$0xff] }
  0x9b   :  { %1054 = vmatpush.msra.mxu3 %v659_v48  ;;  %994 = vmatpush.msra.mxu0 %v227_v20  ;;  %v237_v19 = vld [vmem:[#allocation2 + $0x460] sm:$0xff]  ;;  %v507_v20 = vld [vmem:[#allocation2 + $0xcd0] sm:$0xff] }
  0x9c   :  { %1014 = vmatpush.msra.mxu1 %v371_v21  ;;  %1036 = vmatpush.msra.mxu2 %v497_v22  ;;  %v381_v48 = vld [vmem:[#allocation2 + $0x8e0] sm:$0xff]  ;;  %v660_v21 = vld [vmem:[#allocation2 + $0x1198] sm:$0xff] }
  0x9d   :  { %1055 = vmatpush.msra.mxu3 %v650_v23  ;;  %995 = vmatpush.msra.mxu0 %v218_v52  ;;  %v228_v22 = vld [vmem:[#allocation2 + $0x418] sm:$0xff]  ;;  %v498_v52 = vld [vmem:[#allocation2 + $0xc88] sm:$0xff] }
  0x9e   :  { %1015 = vmatpush.msra.mxu1 %v362_v24  ;;  %1037 = vmatpush.msra.mxu2 %v488_v25  ;;  %v372_v23 = vld [vmem:[#allocation2 + $0x898] sm:$0xff]  ;;  %v651_v24 = vld [vmem:[#allocation2 + $0x1150] sm:$0xff] }
  0x9f   :  { %1056 = vmatpush.msra.mxu3 %v641_v26  ;;  %996 = vmatpush.msra.mxu0 %v209_v27  ;;  %v219_v25 = vld [vmem:[#allocation2 + $0x3d0] sm:$0xff]  ;;  %v489_v27 = vld [vmem:[#allocation2 + $0xc40] sm:$0xff] }
  0xa0   :  { %1016 = vmatpush.msra.mxu1 %v353_v28  ;;  %1038 = vmatpush.msra.mxu2 %v479_v29  ;;  %v363_v26 = vld [vmem:[#allocation2 + $0x850] sm:$0xff]  ;;  %v642_v28 = vld [vmem:[#allocation2 + $0x1108] sm:$0xff] }
  0xa1   :  { %1057 = vmatpush.msra.mxu3 %v632_v32  ;;  %997 = vmatpush.msra.mxu0 %v200_v33  ;;  %v210_v29 = vld [vmem:[#allocation2 + $0x388] sm:$0xff]  ;;  %v480_v33 = vld [vmem:[#allocation2 + $0xbf8] sm:$0xff] }
  0xa2   :  { %1017 = vmatpush.msra.mxu1 %v344_v34  ;;  %1039 = vmatpush.msra.mxu2 %v470_v35  ;;  %v354_v32 = vld [vmem:[#allocation2 + $0x808] sm:$0xff]  ;;  %v633_v34 = vld [vmem:[#allocation2 + $0x10c0] sm:$0xff] }
  0xa3   :  { %1058 = vmatpush.msra.mxu3 %v623_v36  ;;  %998 = vmatpush.msra.mxu0 %v191_v37  ;;  %v201_v35 = vld [vmem:[#allocation2 + $0x340] sm:$0xff]  ;;  %v471_v37 = vld [vmem:[#allocation2 + $0xbb0] sm:$0xff] }
  0xa4   :  { %1018 = vmatpush.msra.mxu1 %v335_v38  ;;  %1040 = vmatpush.msra.mxu2 %v461_v39  ;;  %v345_v36 = vld [vmem:[#allocation2 + $0x7c0] sm:$0xff]  ;;  %v624_v38 = vld [vmem:[#allocation2 + $0x1078] sm:$0xff] }
  0xa5   :  { %1059 = vmatpush.msra.mxu3 %v614_v40  ;;  %999 = vmatpush.msra.mxu0 %v182_v41  ;;  %v192_v39 = vld [vmem:[#allocation2 + $0x2f8] sm:$0xff]  ;;  %v462_v41 = vld [vmem:[#allocation2 + $0xb68] sm:$0xff] }
  0xa6   :  { %1019 = vmatpush.msra.mxu1 %v326_v42  ;;  %1041 = vmatpush.msra.mxu2 %v452_v43  ;;  %v336_v40 = vld [vmem:[#allocation2 + $0x778] sm:$0xff]  ;;  %v615_v42 = vld [vmem:[#allocation2 + $0x1030] sm:$0xff] }
  0xa7   :  { %1060 = vmatpush.msra.mxu3 %v605_v44  ;;  %1000 = vmatpush.msra.mxu0 %v173_v45  ;;  %v183_v43 = vld [vmem:[#allocation2 + $0x2b0] sm:$0xff]  ;;  %v453_v45 = vld [vmem:[#allocation2 + $0xb20] sm:$0xff] }
  0xa8   :  { %1020 = vmatpush.msra.mxu1 %v317_v46  ;;  %1042 = vmatpush.msra.mxu2 %v443_v47  ;;  %v327_v44 = vld [vmem:[#allocation2 + $0x730] sm:$0xff]  ;;  %v606_v46 = vld [vmem:[#allocation2 + $0xfe8] sm:$0xff] }
  0xa9   :  { %1061 = vmatpush.msra.mxu3 %v596_v49  ;;  %1001 = vmatpush.msra.mxu0 %v164_v50  ;;  %v174_v47 = vld [vmem:[#allocation2 + $0x268] sm:$0xff]  ;;  %v444_v50 = vld [vmem:[#allocation2 + $0xad8] sm:$0xff] }
  0xaa   :  { %1021 = vmatpush.msra.mxu1 %v308_v51  ;;  %1043 = vmatpush.msra.mxu2 %v434_v53  ;;  %v318_v49 = vld [vmem:[#allocation2 + $0x6e8] sm:$0xff]  ;;  %v597_v51 = vld [vmem:[#allocation2 + $0xfa0] sm:$0xff] }
  0xab   :  { %1062 = vmatpush.msra.mxu3 %v587_v54  ;;  %1002 = vmatpush.msra.mxu0 %v155_v55  ;;  %v165_v53 = vld [vmem:[#allocation2 + $0x220] sm:$0xff]  ;;  %v435_v55 = vld [vmem:[#allocation2 + $0xa90] sm:$0xff] }
  0xac   :  { %1022 = vmatpush.msra.mxu1 %v299_v56  ;;  %1044 = vmatpush.msra.mxu2 %v425_v57  ;;  %v309_v54 = vld [vmem:[#allocation2 + $0x6a0] sm:$0xff]  ;;  %v588_v56 = vld [vmem:[#allocation2 + $0xf58] sm:$0xff] }
  0xad   :  { %1063 = vmatpush.msra.mxu3 %v578_v58  ;;  %1003 = vmatpush.msra.mxu0 %v146_v59  ;;  %v156_v57 = vld [vmem:[#allocation2 + $0x1d8] sm:$0xff] }
  0xae   :  { %1023 = vmatpush.msra.mxu1 %v290_v60  ;;  %1045 = vmatpush.msra.mxu2 %v416_v61  ;;  %v300_v60 = vld [vmem:[#allocation2 + $0x658] sm:$0xff]  ;;  %v426_v61 = vld [vmem:[#allocation2 + $0xa48] sm:$0xff] }
  0xaf   :  { %1064 = vmatpush.msra.mxu3 %v569_v62  ;;  %1004 = vmatpush.msra.mxu0 %v137_v63  ;;  %v579_v63 = vld [vmem:[#allocation2 + $0xf10] sm:$0xff] }
  0xb0   :  { %1024 = vmatpush.msra.mxu1 %v281_v0  ;;  %1046 = vmatpush.msra.mxu2 %v407_v1  ;;  %v147_v1 = vld [vmem:[#allocation2 + $0x190] sm:$0xff] }
  0xb1   :  { %1065 = vmatpush.msra.mxu3 %v560_v2  ;;  %1005 = vmatpush.msra.mxu0 %v128_v3  ;;  %v291_v2 = vld [vmem:[#allocation2 + $0x610] sm:$0xff] }
  0xb2   :  { %1025 = vmatpush.msra.mxu1 %v272_v4  ;;  %1047 = vmatpush.msra.mxu2 %v398_v5  ;;  %v417_v4 = vld [vmem:[#allocation2 + $0xa00] sm:$0xff]  ;;  %v570_v5 = vld [vmem:[#allocation2 + $0xec8] sm:$0xff] }
  0xb3   :  { %1066 = vmatpush.msra.mxu3 %v551_v6  ;;  %1006 = vmatpush.msra.mxu0 %v119_v7  ;;  %v2254_v7 = vld.sshfl [vmem:[#allocation1] sm:$0xff pattern:$0x75316420] }
  0xb4   :  { %1026 = vmatpush.msra.mxu1 %v263_v8  ;;  %1048 = vmatpush.msra.mxu2 %v389_v9  ;;  %v138_v8 = vld [vmem:[#allocation2 + $0x148] sm:$0xff] }
  0xb5   :  { %1067 = vmatpush.msra.mxu3 %v542_v10  ;;  %1007 = vmatpush.msra.mxu0 %v110_v12  ;;  %v282_v10 = vld [vmem:[#allocation2 + $0x5c8] sm:$0xff]  ;;  %v561_v12 = vld [vmem:[#allocation2 + $0xe80] sm:$0xff] }
  0xb6   :  { %1113 = vmatpush.msrb.mxu2 %v525_v11  ;;  %1027 = vmatpush.msra.mxu1 %v254_v13  ;;  %v408_v11 = vld [vmem:[#allocation2 + $0x9b8] sm:$0xff]  ;;  %v2259_v13 = vld.sshfl [vmem:[#allocation1 + $0x8] sm:$0xff pattern:$0x75316420] }
  0xb7   :  { %1068 = vmatpush.msra.mxu3 %v533_v14  ;;  %1008 = vmatpush.msra.mxu0 %v101_v17  ;;  %v129_v14 = vld [vmem:[#allocation2 + $0x100] sm:$0xff]  ;;  %v552_v17 = vld [vmem:[#allocation2 + $0xe38] sm:$0xff] }
  0xb8   :  { %1114 = vmatpush.msrb.mxu2 %v516_v15  ;;  %1028 = vmatpush.msra.mxu1 %v245_v18  ;;  %v273_v15 = vld [vmem:[#allocation2 + $0x580] sm:$0xff]  ;;  %v120_v18 = vld [vmem:[#allocation2 + $0xb8] sm:$0xff] }
  0xb9   :  { %1133 = vmatpush.msrb.mxu3 %v669_v16  ;;  %1073 = vmatpush.msrb.mxu0 %v237_v19  ;;  %v399_v16 = vld [vmem:[#allocation2 + $0x970] sm:$0xff]  ;;  %v264_v19 = vld [vmem:[#allocation2 + $0x538] sm:$0xff] }
  0xba   :  { %1093 = vmatpush.msrb.mxu1 %v381_v48  ;;  %1115 = vmatpush.msrb.mxu2 %v507_v20  ;;  %v390_v48 = vld [vmem:[#allocation2 + $0x928] sm:$0xff]  ;;  %v543_v20 = vld [vmem:[#allocation2 + $0xdf0] sm:$0xff] }
  0xbb   :  { %1134 = vmatpush.msrb.mxu3 %v660_v21  ;;  %1074 = vmatpush.msrb.mxu0 %v228_v22  ;;  %v526_v21 = vld [vmem:[#allocation2 + $0xd68] sm:$0xff]  ;;  %v111_v22 = vld [vmem:[#allocation2 + $0x70] sm:$0xff] }
  0xbc   :  { %1094 = vmatpush.msrb.mxu1 %v372_v23  ;;  %1116 = vmatpush.msrb.mxu2 %v498_v52  ;;  %v255_v23 = vld [vmem:[#allocation2 + $0x4f0] sm:$0xff]  ;;  %v534_v52 = vld [vmem:[#allocation2 + $0xda8] sm:$0xff] }
  0xbd   :  { %1135 = vmatpush.msrb.mxu3 %v651_v24  ;;  %1075 = vmatpush.msrb.mxu0 %v219_v25  ;;  %v517_v24 = vld [vmem:[#allocation2 + $0xd20] sm:$0xff]  ;;  %v670_v25 = vld [vmem:[#allocation2 + $0x11e8] sm:$0xff] }
  0xbe   :  { %1095 = vmatpush.msrb.mxu1 %v363_v26  ;;  %1117 = vmatpush.msrb.mxu2 %v489_v27  ;;  %v102_v26 = vld [vmem:[#allocation2 + $0x28] sm:$0xff] }
  0xbf   :  { %1136 = vmatpush.msrb.mxu3 %v642_v28  ;;  %1076 = vmatpush.msrb.mxu0 %v210_v29  ;;  %v246_v27 = vld [vmem:[#allocation2 + $0x4a8] sm:$0xff] }
  0xc0   :  { %1096 = vmatpush.msrb.mxu1 %v354_v32  ;;  %1118 = vmatpush.msrb.mxu2 %v480_v33  ;;  %v238_v28 = vld [vmem:[#allocation2 + $0x468] sm:$0xff]  ;;  %v508_v32 = vld [vmem:[#allocation2 + $0xcd8] sm:$0xff]  ;;  %v661_v33 = vld [vmem:[#allocation2 + $0x11a0] sm:$0xff] }
  0xc1   :  { %1137 = vmatpush.msrb.mxu3 %v633_v34  ;;  %1077 = vmatpush.msrb.mxu0 %v201_v35  ;;  %v382_v29 = vld [vmem:[#allocation2 + $0x8e8] sm:$0xff]  ;;  %v229_v34 = vld [vmem:[#allocation2 + $0x420] sm:$0xff] }
  0xc2   :  { %1097 = vmatpush.msrb.mxu1 %v345_v36  ;;  %1119 = vmatpush.msrb.mxu2 %v471_v37  ;;  %v373_v35 = vld [vmem:[#allocation2 + $0x8a0] sm:$0xff]  ;;  %v499_v36 = vld [vmem:[#allocation2 + $0xc90] sm:$0xff]  ;;  %v652_v37 = vld [vmem:[#allocation2 + $0x1158] sm:$0xff] }
  0xc3   :  { %1138 = vmatpush.msrb.mxu3 %v624_v38  ;;  %1078 = vmatpush.msrb.mxu0 %v192_v39  ;;  %v220_v38 = vld [vmem:[#allocation2 + $0x3d8] sm:$0xff] }
  0xc4   :  { %1098 = vmatpush.msrb.mxu1 %v336_v40  ;;  %1120 = vmatpush.msrb.mxu2 %v462_v41  ;;  %v364_v39 = vld [vmem:[#allocation2 + $0x858] sm:$0xff]  ;;  %v490_v40 = vld [vmem:[#allocation2 + $0xc48] sm:$0xff]  ;;  %v643_v41 = vld [vmem:[#allocation2 + $0x1110] sm:$0xff] }
  0xc5   :  { %1139 = vmatpush.msrb.mxu3 %v615_v42  ;;  %1079 = vmatpush.msrb.mxu0 %v183_v43  ;;  %v211_v42 = vld [vmem:[#allocation2 + $0x390] sm:$0xff] }
  0xc6   :  { %1099 = vmatpush.msrb.mxu1 %v327_v44  ;;  %1121 = vmatpush.msrb.mxu2 %v453_v45  ;;  %v355_v43 = vld [vmem:[#allocation2 + $0x810] sm:$0xff]  ;;  %v481_v44 = vld [vmem:[#allocation2 + $0xc00] sm:$0xff]  ;;  %v634_v45 = vld [vmem:[#allocation2 + $0x10c8] sm:$0xff] }
  0xc7   :  { %1140 = vmatpush.msrb.mxu3 %v606_v46  ;;  %1080 = vmatpush.msrb.mxu0 %v174_v47  ;;  %v690_v58 = vpop.f32.mrf.mxu0  ;;  %v202_v46 = vld [vmem:[#allocation2 + $0x348] sm:$0xff] }
  0xc8   :  { %1100 = vmatpush.msrb.mxu1 %v318_v49  ;;  %1122 = vmatpush.msrb.mxu2 %v444_v50  ;;  %v710_v59 = vpop.f32.mrf.mxu1  ;;  %v346_v47 = vld [vmem:[#allocation2 + $0x7c8] sm:$0xff]  ;;  %v472_v49 = vld [vmem:[#allocation2 + $0xbb8] sm:$0xff]  ;;  %v625_v50 = vld [vmem:[#allocation2 + $0x1080] sm:$0xff] }
  0xc9   :  { %1141 = vmatpush.msrb.mxu3 %v597_v51  ;;  %1081 = vmatpush.msrb.mxu0 %v165_v53  ;;  %v711_v62 = vadd.f32 %v710_v59, %v690_v58  ;;  %v730_v0 = vpop.f32.mrf.mxu2  ;;  %v193_v51 = vld [vmem:[#allocation2 + $0x300] sm:$0xff]  ;;  %v454_v58 = vld [vmem:[#allocation2 + $0xb28] sm:$0xff]  ;;  %v607_v59 = vld [vmem:[#allocation2 + $0xff0] sm:$0xff] }
  0xca   :  { %1101 = vmatpush.msrb.mxu1 %v309_v54  ;;  %1123 = vmatpush.msrb.mxu2 %v435_v55  ;;  %v337_v53 = vld [vmem:[#allocation2 + $0x780] sm:$0xff]  ;;  %v463_v54 = vld [vmem:[#allocation2 + $0xb70] sm:$0xff]  ;;  %v616_v55 = vld [vmem:[#allocation2 + $0x1038] sm:$0xff] }
  0xcb   :  { %1142 = vmatpush.msrb.mxu3 %v588_v56  ;;  %1082 = vmatpush.msrb.mxu0 %v156_v57  ;;  %v731_v3 = vadd.f32 %v730_v0, %v711_v62  ;;  %v750_v6 = vpop.f32.mrf.mxu3  ;;  %v184_v56 = vld [vmem:[#allocation2 + $0x2b8] sm:$0xff]  ;;  %v445_v62 = vld [vmem:[#allocation2 + $0xae0] sm:$0xff]  ;;  %v166_v0 = vld [vmem:[#allocation2 + $0x228] sm:$0xff] }
  0xcc   :  { %1102 = vmatpush.msrb.mxu1 %v300_v60  ;;  %1124 = vmatpush.msrb.mxu2 %v426_v61  ;;  %v328_v57 = vld [vmem:[#allocation2 + $0x738] sm:$0xff]  ;;  %v175_v60 = vld [vmem:[#allocation2 + $0x270] sm:$0xff] }
  0xcd   :  { %1143 = vmatpush.msrb.mxu3 %v579_v63  ;;  %1049 = vmatmul.f32.vlgmr.msra.gmra.mxu2 %v2254_v7  ;;  %v2257_v9 = vadd.f32 %v750_v6, %v731_v3  ;;  %v319_v61 = vld [vmem:[#allocation2 + $0x6f0] sm:$0xff]  ;;  %v598_v63 = vld [vmem:[#allocation2 + $0xfa8] sm:$0xff]  ;;  %v589_v3 = vld [vmem:[#allocation2 + $0xf60] sm:$0xff] }
  0xce   :  { %1083 = vmatpush.msrb.mxu0 %v147_v1  ;;  %1103 = vmatpush.msrb.mxu1 %v291_v2  ;;  %v310_v1 = vld [vmem:[#allocation2 + $0x6a8] sm:$0xff]  ;;  %v436_v2 = vld [vmem:[#allocation2 + $0xa98] sm:$0xff]  ;;  %v427_v6 = vld [vmem:[#allocation2 + $0xa50] sm:$0xff] }
  0xcf   :  { %1125 = vmatpush.msrb.mxu2 %v417_v4  ;;  %1144 = vmatpush.msrb.mxu3 %v570_v5  ;;  %v157_v4 = vld [vmem:[#allocation2 + $0x1e0] sm:$0xff] }
  0xd0   :  { %1069 = vmatmul.f32.vlgmr.msra.gmra.mxu3 %v2259_v13  ;;  %1084 = vmatpush.msrb.mxu0 %v138_v8  ;;  %v301_v5 = vld [vmem:[#allocation2 + $0x660] sm:$0xff]  ;;  %v580_v8 = vld [vmem:[#allocation2 + $0xf18] sm:$0xff] }
  0xd1   :  { %1104 = vmatpush.msrb.mxu1 %v282_v10  ;;  %1126 = vmatpush.msrb.mxu2 %v408_v11  ;;  %v148_v10 = vld [vmem:[#allocation2 + $0x198] sm:$0xff] }
  0xd2   :  { %1145 = vmatpush.msrb.mxu3 %v561_v12  ;;  %1009 = vmatmul.f32.vlgmr.msra.gmra.mxu0 %v2230_v30  ;;  %v292_v11 = vld [vmem:[#allocation2 + $0x618] sm:$0xff]  ;;  %v418_v12 = vld [vmem:[#allocation2 + $0xa08] sm:$0xff] }
  0xd3   :  { %1029 = vmatmul.f32.vlgmr.msra.gmra.mxu1 %v2232_v31  ;;  %1085 = vmatpush.msrb.mxu0 %v129_v14  ;;  %v571_v14 = vld [vmem:[#allocation2 + $0xed0] sm:$0xff] }
  0xd4   :  { %1105 = vmatpush.msrb.mxu1 %v273_v15  ;;  %1127 = vmatpush.msrb.mxu2 %v399_v16  ;;  %v139_v15 = vld [vmem:[#allocation2 + $0x150] sm:$0xff] }
  0xd5   :  { %1146 = vmatpush.msrb.mxu3 %v552_v17  ;;  %1086 = vmatpush.msrb.mxu0 %v120_v18  ;;  %v283_v16 = vld [vmem:[#allocation2 + $0x5d0] sm:$0xff]  ;;  %v409_v17 = vld [vmem:[#allocation2 + $0x9c0] sm:$0xff]  ;;  %v562_v18 = vld [vmem:[#allocation2 + $0xe88] sm:$0xff] }
  0xd6   :  { %1106 = vmatpush.msrb.mxu1 %v264_v19  ;;  %1128 = vmatpush.msrb.mxu2 %v390_v48  ;;  %v130_v19 = vld [vmem:[#allocation2 + $0x108] sm:$0xff] }
  0xd7   :  { %1147 = vmatpush.msrb.mxu3 %v543_v20  ;;  %1129 = vmatmul.f32.vlgmr.msrb.gmra.mxu2 %v2254_v7  ;;  %v274_v48 = vld [vmem:[#allocation2 + $0x588] sm:$0xff]  ;;  %v400_v20 = vld [vmem:[#allocation2 + $0x978] sm:$0xff] }
  0xd8   :  { %1193 = vmatpush.msra.mxu2 %v526_v21  ;;  %1087 = vmatpush.msrb.mxu0 %v111_v22  ;;  %v553_v21 = vld [vmem:[#allocation2 + $0xe40] sm:$0xff] }
  0xd9   :  { %1107 = vmatpush.msrb.mxu1 %v255_v23  ;;  %1148 = vmatpush.msrb.mxu3 %v534_v52  ;;  %v121_v22 = vld [vmem:[#allocation2 + $0xc0] sm:$0xff]  ;;  %v391_v52 = vld [vmem:[#allocation2 + $0x930] sm:$0xff] }
  0xda   :  { %1149 = vmatmul.f32.vlgmr.msrb.gmra.mxu3 %v2259_v13  ;;  %1194 = vmatpush.msra.mxu2 %v517_v24  ;;  %v265_v23 = vld [vmem:[#allocation2 + $0x540] sm:$0xff]  ;;  %v544_v24 = vld [vmem:[#allocation2 + $0xdf8] sm:$0xff] }
  0xdb   :  { %1213 = vmatpush.msra.mxu3 %v670_v25  ;;  %1088 = vmatpush.msrb.mxu0 %v102_v26  ;;  %v527_v25 = vld [vmem:[#allocation2 + $0xd70] sm:$0xff]  ;;  %v112_v26 = vld [vmem:[#allocation2 + $0x78] sm:$0xff] }
  0xdc   :  { %1108 = vmatpush.msrb.mxu1 %v246_v27  ;;  %1089 = vmatmul.f32.vlgmr.msrb.gmra.mxu0 %v2230_v30  ;;  %v256_v27 = vld [vmem:[#allocation2 + $0x4f8] sm:$0xff] }
  0xdd   :  { %1109 = vmatmul.f32.vlgmr.msrb.gmra.mxu1 %v2232_v31  ;;  %1153 = vmatpush.msra.mxu0 %v238_v28  ;;  %v535_v28 = vld [vmem:[#allocation2 + $0xdb0] sm:$0xff] }
  0xde   :  { %1173 = vmatpush.msra.mxu1 %v382_v29  ;;  %1195 = vmatpush.msra.mxu2 %v508_v32  ;;  %v518_v29 = vld [vmem:[#allocation2 + $0xd28] sm:$0xff]  ;;  %v671_v32 = vld [vmem:[#allocation2 + $0x11f0] sm:$0xff] }
  0xdf   :  { %1214 = vmatpush.msra.mxu3 %v661_v33  ;;  %1154 = vmatpush.msra.mxu0 %v229_v34  ;;  %v103_v33 = vld [vmem:[#allocation2 + $0x30] sm:$0xff] }
  0xe0   :  { %1174 = vmatpush.msra.mxu1 %v373_v35  ;;  %1196 = vmatpush.msra.mxu2 %v499_v36  ;;  %v247_v34 = vld [vmem:[#allocation2 + $0x4b0] sm:$0xff] }
  0xe1   :  { %1215 = vmatpush.msra.mxu3 %v652_v37  ;;  %1155 = vmatpush.msra.mxu0 %v220_v38  ;;  %v239_v35 = vld [vmem:[#allocation2 + $0x470] sm:$0xff]  ;;  %v509_v37 = vld [vmem:[#allocation2 + $0xce0] sm:$0xff]  ;;  %v662_v38 = vld [vmem:[#allocation2 + $0x11a8] sm:$0xff] }
  0xe2   :  { %1175 = vmatpush.msra.mxu1 %v364_v39  ;;  %1197 = vmatpush.msra.mxu2 %v490_v40  ;;  %v383_v36 = vld [vmem:[#allocation2 + $0x8f0] sm:$0xff]  ;;  %v230_v39 = vld [vmem:[#allocation2 + $0x428] sm:$0xff] }
  0xe3   :  { %1216 = vmatpush.msra.mxu3 %v643_v41  ;;  %1156 = vmatpush.msra.mxu0 %v211_v42  ;;  %v374_v40 = vld [vmem:[#allocation2 + $0x8a8] sm:$0xff]  ;;  %v500_v41 = vld [vmem:[#allocation2 + $0xc98] sm:$0xff]  ;;  %v653_v42 = vld [vmem:[#allocation2 + $0x1160] sm:$0xff] }
  0xe4   :  { %1176 = vmatpush.msra.mxu1 %v355_v43  ;;  %1198 = vmatpush.msra.mxu2 %v481_v44  ;;  %v221_v43 = vld [vmem:[#allocation2 + $0x3e0] sm:$0xff] }
  0xe5   :  { %1217 = vmatpush.msra.mxu3 %v634_v45  ;;  %1157 = vmatpush.msra.mxu0 %v202_v46  ;;  %v365_v44 = vld [vmem:[#allocation2 + $0x860] sm:$0xff]  ;;  %v491_v45 = vld [vmem:[#allocation2 + $0xc50] sm:$0xff]  ;;  %v644_v46 = vld [vmem:[#allocation2 + $0x1118] sm:$0xff] }
  0xe6   :  { %1177 = vmatpush.msra.mxu1 %v346_v47  ;;  %1199 = vmatpush.msra.mxu2 %v472_v49  ;;  %v212_v47 = vld [vmem:[#allocation2 + $0x398] sm:$0xff] }
  0xe7   :  { %1218 = vmatpush.msra.mxu3 %v625_v50  ;;  %1158 = vmatpush.msra.mxu0 %v193_v51  ;;  %v356_v49 = vld [vmem:[#allocation2 + $0x818] sm:$0xff]  ;;  %v482_v50 = vld [vmem:[#allocation2 + $0xc08] sm:$0xff]  ;;  %v635_v51 = vld [vmem:[#allocation2 + $0x10d0] sm:$0xff] }
  0xe8   :  { %1178 = vmatpush.msra.mxu1 %v337_v53  ;;  %1200 = vmatpush.msra.mxu2 %v463_v54  ;;  %v203_v53 = vld [vmem:[#allocation2 + $0x350] sm:$0xff] }
  0xe9   :  { %1219 = vmatpush.msra.mxu3 %v616_v55  ;;  %1159 = vmatpush.msra.mxu0 %v184_v56  ;;  %v347_v54 = vld [vmem:[#allocation2 + $0x7d0] sm:$0xff]  ;;  %v473_v55 = vld [vmem:[#allocation2 + $0xbc0] sm:$0xff]  ;;  %v626_v56 = vld [vmem:[#allocation2 + $0x1088] sm:$0xff] }
  0xea   :  { %1179 = vmatpush.msra.mxu1 %v328_v57  ;;  %1201 = vmatpush.msra.mxu2 %v454_v58  ;;  %v194_v57 = vld [vmem:[#allocation2 + $0x308] sm:$0xff] }
  0xeb   :  { %1220 = vmatpush.msra.mxu3 %v607_v59  ;;  %1160 = vmatpush.msra.mxu0 %v175_v60  ;;  %v338_v58 = vld [vmem:[#allocation2 + $0x788] sm:$0xff]  ;;  %v464_v59 = vld [vmem:[#allocation2 + $0xb78] sm:$0xff]  ;;  %v617_v60 = vld [vmem:[#allocation2 + $0x1040] sm:$0xff] }
  0xec   :  { %1180 = vmatpush.msra.mxu1 %v319_v61  ;;  %1202 = vmatpush.msra.mxu2 %v445_v62  ;;  %v185_v61 = vld [vmem:[#allocation2 + $0x2c0] sm:$0xff] }
  0xed   :  { %1221 = vmatpush.msra.mxu3 %v598_v63  ;;  %1161 = vmatpush.msra.mxu0 %v166_v0  ;;  %v329_v62 = vld [vmem:[#allocation2 + $0x740] sm:$0xff]  ;;  %v455_v63 = vld [vmem:[#allocation2 + $0xb30] sm:$0xff]  ;;  %v608_v0 = vld [vmem:[#allocation2 + $0xff8] sm:$0xff] }
  0xee   :  { %1181 = vmatpush.msra.mxu1 %v310_v1  ;;  %1203 = vmatpush.msra.mxu2 %v436_v2  ;;  %v176_v1 = vld [vmem:[#allocation2 + $0x278] sm:$0xff] }
  0xef   :  { %1222 = vmatpush.msra.mxu3 %v589_v3  ;;  %1162 = vmatpush.msra.mxu0 %v157_v4  ;;  %v320_v2 = vld [vmem:[#allocation2 + $0x6f8] sm:$0xff]  ;;  %v446_v3 = vld [vmem:[#allocation2 + $0xae8] sm:$0xff]  ;;  %v599_v4 = vld [vmem:[#allocation2 + $0xfb0] sm:$0xff] }
  0xf0   :  { %1182 = vmatpush.msra.mxu1 %v301_v5  ;;  %1204 = vmatpush.msra.mxu2 %v427_v6  ;;  %v167_v5 = vld [vmem:[#allocation2 + $0x230] sm:$0xff] }
  0xf1   :  { %1223 = vmatpush.msra.mxu3 %v580_v8  ;;  %1163 = vmatpush.msra.mxu0 %v148_v10  ;;  %v311_v6 = vld [vmem:[#allocation2 + $0x6b0] sm:$0xff]  ;;  %v437_v8 = vld [vmem:[#allocation2 + $0xaa0] sm:$0xff]  ;;  %v590_v10 = vld [vmem:[#allocation2 + $0xf68] sm:$0xff] }
  0xf2   :  { %1183 = vmatpush.msra.mxu1 %v292_v11  ;;  %1205 = vmatpush.msra.mxu2 %v418_v12  ;;  %v158_v11 = vld [vmem:[#allocation2 + $0x1e8] sm:$0xff] }
  0xf3   :  { %1224 = vmatpush.msra.mxu3 %v571_v14  ;;  %1164 = vmatpush.msra.mxu0 %v139_v15  ;;  %v302_v12 = vld [vmem:[#allocation2 + $0x668] sm:$0xff]  ;;  %v428_v14 = vld [vmem:[#allocation2 + $0xa58] sm:$0xff]  ;;  %v581_v15 = vld [vmem:[#allocation2 + $0xf20] sm:$0xff] }
  0xf4   :  { %1184 = vmatpush.msra.mxu1 %v283_v16  ;;  %1206 = vmatpush.msra.mxu2 %v409_v17  ;;  %v149_v16 = vld [vmem:[#allocation2 + $0x1a0] sm:$0xff] }
  0xf5   :  { %1225 = vmatpush.msra.mxu3 %v562_v18  ;;  %1165 = vmatpush.msra.mxu0 %v130_v19  ;;  %v293_v17 = vld [vmem:[#allocation2 + $0x620] sm:$0xff]  ;;  %v419_v18 = vld [vmem:[#allocation2 + $0xa10] sm:$0xff]  ;;  %v572_v19 = vld [vmem:[#allocation2 + $0xed8] sm:$0xff] }
  0xf6   :  { %1185 = vmatpush.msra.mxu1 %v274_v48  ;;  %1207 = vmatpush.msra.mxu2 %v400_v20  ;;  %v140_v48 = vld [vmem:[#allocation2 + $0x158] sm:$0xff] }
  0xf7   :  { %1226 = vmatpush.msra.mxu3 %v553_v21  ;;  %1166 = vmatpush.msra.mxu0 %v121_v22  ;;  %v284_v20 = vld [vmem:[#allocation2 + $0x5d8] sm:$0xff]  ;;  %v410_v21 = vld [vmem:[#allocation2 + $0x9c8] sm:$0xff]  ;;  %v563_v22 = vld [vmem:[#allocation2 + $0xe90] sm:$0xff] }
  0xf8   :  { %1186 = vmatpush.msra.mxu1 %v265_v23  ;;  %1208 = vmatpush.msra.mxu2 %v391_v52  ;;  %v131_v23 = vld [vmem:[#allocation2 + $0x110] sm:$0xff] }
  0xf9   :  { %1227 = vmatpush.msra.mxu3 %v544_v24  ;;  %1167 = vmatpush.msra.mxu0 %v112_v26  ;;  %v275_v52 = vld [vmem:[#allocation2 + $0x590] sm:$0xff]  ;;  %v401_v24 = vld [vmem:[#allocation2 + $0x980] sm:$0xff]  ;;  %v122_v26 = vld [vmem:[#allocation2 + $0xc8] sm:$0xff] }
  0xfa   :  { %1273 = vmatpush.msrb.mxu2 %v527_v25  ;;  %1187 = vmatpush.msra.mxu1 %v256_v27  ;;  %v554_v25 = vld [vmem:[#allocation2 + $0xe48] sm:$0xff] }
  0xfb   :  { %1228 = vmatpush.msra.mxu3 %v535_v28  ;;  %1168 = vmatpush.msra.mxu0 %v103_v33  ;;  %v266_v27 = vld [vmem:[#allocation2 + $0x548] sm:$0xff]  ;;  %v392_v28 = vld [vmem:[#allocation2 + $0x938] sm:$0xff]  ;;  %v113_v33 = vld [vmem:[#allocation2 + $0x80] sm:$0xff] }
  0xfc   :  { %1274 = vmatpush.msrb.mxu2 %v518_v29  ;;  %1188 = vmatpush.msra.mxu1 %v247_v34  ;;  %v545_v29 = vld [vmem:[#allocation2 + $0xe00] sm:$0xff] }
  0xfd   :  { %1293 = vmatpush.msrb.mxu3 %v671_v32  ;;  %1233 = vmatpush.msrb.mxu0 %v239_v35  ;;  %v528_v32 = vld [vmem:[#allocation2 + $0xd78] sm:$0xff]  ;;  %v257_v34 = vld [vmem:[#allocation2 + $0x500] sm:$0xff] }
  0xfe   :  { %1253 = vmatpush.msrb.mxu1 %v383_v36  ;;  %1275 = vmatpush.msrb.mxu2 %v509_v37  ;;  %v536_v35 = vld [vmem:[#allocation2 + $0xdb8] sm:$0xff]  ;;  %v519_v36 = vld [vmem:[#allocation2 + $0xd30] sm:$0xff] }
  0xff   :  { %1294 = vmatpush.msrb.mxu3 %v662_v38  ;;  %1234 = vmatpush.msrb.mxu0 %v230_v39  ;;  %v672_v37 = vld [vmem:[#allocation2 + $0x11f8] sm:$0xff] }
 0x100   :  { %1254 = vmatpush.msrb.mxu1 %v374_v40  ;;  %1276 = vmatpush.msrb.mxu2 %v500_v41  ;;  %v104_v38 = vld [vmem:[#allocation2 + $0x38] sm:$0xff] }
 0x101   :  { %1295 = vmatpush.msrb.mxu3 %v653_v42  ;;  %1235 = vmatpush.msrb.mxu0 %v221_v43  ;;  %v248_v39 = vld [vmem:[#allocation2 + $0x4b8] sm:$0xff]  ;;  %v510_v42 = vld [vmem:[#allocation2 + $0xce8] sm:$0xff]  ;;  %v663_v43 = vld [vmem:[#allocation2 + $0x11b0] sm:$0xff] }
 0x102   :  { %1255 = vmatpush.msrb.mxu1 %v365_v44  ;;  %1277 = vmatpush.msrb.mxu2 %v491_v45  ;;  %v240_v40 = vld [vmem:[#allocation2 + $0x478] sm:$0xff]  ;;  %v231_v44 = vld [vmem:[#allocation2 + $0x430] sm:$0xff] }
 0x103   :  { %1296 = vmatpush.msrb.mxu3 %v644_v46  ;;  %1236 = vmatpush.msrb.mxu0 %v212_v47  ;;  %v384_v41 = vld [vmem:[#allocation2 + $0x8f8] sm:$0xff]  ;;  %v375_v45 = vld [vmem:[#allocation2 + $0x8b0] sm:$0xff]  ;;  %v501_v46 = vld [vmem:[#allocation2 + $0xca0] sm:$0xff] }
 0x104   :  { %1256 = vmatpush.msrb.mxu1 %v356_v49  ;;  %1278 = vmatpush.msrb.mxu2 %v482_v50  ;;  %v654_v47 = vld [vmem:[#allocation2 + $0x1168] sm:$0xff] }
 0x105   :  { %1297 = vmatpush.msrb.mxu3 %v635_v51  ;;  %1237 = vmatpush.msrb.mxu0 %v203_v53  ;;  %v222_v49 = vld [vmem:[#allocation2 + $0x3e8] sm:$0xff]  ;;  %v492_v51 = vld [vmem:[#allocation2 + $0xc58] sm:$0xff]  ;;  %v645_v53 = vld [vmem:[#allocation2 + $0x1120] sm:$0xff] }
 0x106   :  { %1257 = vmatpush.msrb.mxu1 %v347_v54  ;;  %1279 = vmatpush.msrb.mxu2 %v473_v55  ;;  %v366_v50 = vld [vmem:[#allocation2 + $0x868] sm:$0xff]  ;;  %v213_v54 = vld [vmem:[#allocation2 + $0x3a0] sm:$0xff] }
 0x107   :  { %1298 = vmatpush.msrb.mxu3 %v626_v56  ;;  %1238 = vmatpush.msrb.mxu0 %v194_v57  ;;  %v357_v55 = vld [vmem:[#allocation2 + $0x820] sm:$0xff]  ;;  %v483_v56 = vld [vmem:[#allocation2 + $0xc10] sm:$0xff]  ;;  %v636_v57 = vld [vmem:[#allocation2 + $0x10d8] sm:$0xff] }
 0x108   :  { %1258 = vmatpush.msrb.mxu1 %v338_v58  ;;  %1280 = vmatpush.msrb.mxu2 %v464_v59  ;;  %v204_v58 = vld [vmem:[#allocation2 + $0x358] sm:$0xff] }
 0x109   :  { %1299 = vmatpush.msrb.mxu3 %v617_v60  ;;  %1239 = vmatpush.msrb.mxu0 %v185_v61  ;;  %v348_v59 = vld [vmem:[#allocation2 + $0x7d8] sm:$0xff]  ;;  %v474_v60 = vld [vmem:[#allocation2 + $0xbc8] sm:$0xff]  ;;  %v627_v61 = vld [vmem:[#allocation2 + $0x1090] sm:$0xff] }
 0x10a   :  { %1259 = vmatpush.msrb.mxu1 %v329_v62  ;;  %1281 = vmatpush.msrb.mxu2 %v455_v63  ;;  %v195_v62 = vld [vmem:[#allocation2 + $0x310] sm:$0xff] }
 0x10b   :  { %1300 = vmatpush.msrb.mxu3 %v608_v0  ;;  %1240 = vmatpush.msrb.mxu0 %v176_v1  ;;  %v339_v63 = vld [vmem:[#allocation2 + $0x790] sm:$0xff]  ;;  %v465_v0 = vld [vmem:[#allocation2 + $0xb80] sm:$0xff]  ;;  %v618_v1 = vld [vmem:[#allocation2 + $0x1048] sm:$0xff] }
 0x10c   :  { %1260 = vmatpush.msrb.mxu1 %v320_v2  ;;  %1282 = vmatpush.msrb.mxu2 %v446_v3  ;;  %v186_v2 = vld [vmem:[#allocation2 + $0x2c8] sm:$0xff] }
 0x10d   :  { %1301 = vmatpush.msrb.mxu3 %v599_v4  ;;  %1241 = vmatpush.msrb.mxu0 %v167_v5  ;;  %v330_v3 = vld [vmem:[#allocation2 + $0x748] sm:$0xff]  ;;  %v456_v4 = vld [vmem:[#allocation2 + $0xb38] sm:$0xff]  ;;  %v609_v5 = vld [vmem:[#allocation2 + $0x1000] sm:$0xff] }
 0x10e   :  { %1261 = vmatpush.msrb.mxu1 %v311_v6  ;;  %1283 = vmatpush.msrb.mxu2 %v437_v8  ;;  %v177_v6 = vld [vmem:[#allocation2 + $0x280] sm:$0xff] }
 0x10f   :  { %1302 = vmatpush.msrb.mxu3 %v590_v10  ;;  %1242 = vmatpush.msrb.mxu0 %v158_v11  ;;  %v321_v8 = vld [vmem:[#allocation2 + $0x700] sm:$0xff]  ;;  %v447_v10 = vld [vmem:[#allocation2 + $0xaf0] sm:$0xff]  ;;  %v600_v11 = vld [vmem:[#allocation2 + $0xfb8] sm:$0xff] }
 0x110   :  { %1262 = vmatpush.msrb.mxu1 %v302_v12  ;;  %1284 = vmatpush.msrb.mxu2 %v428_v14  ;;  %v168_v12 = vld [vmem:[#allocation2 + $0x238] sm:$0xff] }
 0x111   :  { %1303 = vmatpush.msrb.mxu3 %v581_v15  ;;  %1209 = vmatmul.f32.vlgmr.msra.gmra.mxu2 %v2254_v7  ;;  %v312_v14 = vld [vmem:[#allocation2 + $0x6b8] sm:$0xff]  ;;  %v438_v15 = vld [vmem:[#allocation2 + $0xaa8] sm:$0xff] }
 0x112   :  { %1243 = vmatpush.msrb.mxu0 %v149_v16  ;;  %1263 = vmatpush.msrb.mxu1 %v293_v17  ;;  %v591_v16 = vld [vmem:[#allocation2 + $0xf70] sm:$0xff] }
 0x113   :  { %1285 = vmatpush.msrb.mxu2 %v419_v18  ;;  %1304 = vmatpush.msrb.mxu3 %v572_v19  ;;  %v159_v17 = vld [vmem:[#allocation2 + $0x1f0] sm:$0xff]  ;;  %v429_v19 = vld [vmem:[#allocation2 + $0xa60] sm:$0xff] }
 0x114   :  { %1229 = vmatmul.f32.vlgmr.msra.gmra.mxu3 %v2259_v13  ;;  %1244 = vmatpush.msrb.mxu0 %v140_v48  ;;  %v303_v18 = vld [vmem:[#allocation2 + $0x670] sm:$0xff]  ;;  %v582_v48 = vld [vmem:[#allocation2 + $0xf28] sm:$0xff] }
 0x115   :  { %1264 = vmatpush.msrb.mxu1 %v284_v20  ;;  %1286 = vmatpush.msrb.mxu2 %v410_v21  ;;  %v150_v20 = vld [vmem:[#allocation2 + $0x1a8] sm:$0xff] }
 0x116   :  { %1305 = vmatpush.msrb.mxu3 %v563_v22  ;;  %1169 = vmatmul.f32.vlgmr.msra.gmra.mxu0 %v2230_v30  ;;  %v294_v21 = vld [vmem:[#allocation2 + $0x628] sm:$0xff]  ;;  %v420_v22 = vld [vmem:[#allocation2 + $0xa18] sm:$0xff] }
 0x117   :  { %1189 = vmatmul.f32.vlgmr.msra.gmra.mxu1 %v2232_v31  ;;  %1245 = vmatpush.msrb.mxu0 %v131_v23  ;;  %v573_v23 = vld [vmem:[#allocation2 + $0xee0] sm:$0xff] }
 0x118   :  { %1265 = vmatpush.msrb.mxu1 %v275_v52  ;;  %1287 = vmatpush.msrb.mxu2 %v401_v24  ;;  %v141_v52 = vld [vmem:[#allocation2 + $0x160] sm:$0xff] }
 0x119   :  { %1306 = vmatpush.msrb.mxu3 %v554_v25  ;;  %1246 = vmatpush.msrb.mxu0 %v122_v26  ;;  %v285_v24 = vld [vmem:[#allocation2 + $0x5e0] sm:$0xff]  ;;  %v411_v25 = vld [vmem:[#allocation2 + $0x9d0] sm:$0xff]  ;;  %v564_v26 = vld [vmem:[#allocation2 + $0xe98] sm:$0xff] }
 0x11a   :  { %1266 = vmatpush.msrb.mxu1 %v266_v27  ;;  %1288 = vmatpush.msrb.mxu2 %v392_v28  ;;  %v132_v27 = vld [vmem:[#allocation2 + $0x118] sm:$0xff] }
 0x11b   :  { %1307 = vmatpush.msrb.mxu3 %v545_v29  ;;  %1289 = vmatmul.f32.vlgmr.msrb.gmra.mxu2 %v2254_v7  ;;  %v276_v28 = vld [vmem:[#allocation2 + $0x598] sm:$0xff]  ;;  %v402_v29 = vld [vmem:[#allocation2 + $0x988] sm:$0xff] }
 0x11c   :  { %1353 = vmatpush.msra.mxu2 %v528_v32  ;;  %1247 = vmatpush.msrb.mxu0 %v113_v33  ;;  %v555_v32 = vld [vmem:[#allocation2 + $0xe50] sm:$0xff] }
 0x11d   :  { %1267 = vmatpush.msrb.mxu1 %v257_v34  ;;  %1308 = vmatpush.msrb.mxu3 %v536_v35  ;;  %v123_v33 = vld [vmem:[#allocation2 + $0xd0] sm:$0xff]  ;;  %v393_v35 = vld [vmem:[#allocation2 + $0x940] sm:$0xff] }
 0x11e   :  { %1309 = vmatmul.f32.vlgmr.msrb.gmra.mxu3 %v2259_v13  ;;  %1354 = vmatpush.msra.mxu2 %v519_v36  ;;  %v267_v34 = vld [vmem:[#allocation2 + $0x550] sm:$0xff]  ;;  %v546_v36 = vld [vmem:[#allocation2 + $0xe08] sm:$0xff] }
 0x11f   :  { %1373 = vmatpush.msra.mxu3 %v672_v37  ;;  %1248 = vmatpush.msrb.mxu0 %v104_v38  ;;  %v114_v37 = vld [vmem:[#allocation2 + $0x88] sm:$0xff] }
 0x120   :  { %1268 = vmatpush.msrb.mxu1 %v248_v39  ;;  %1249 = vmatmul.f32.vlgmr.msrb.gmra.mxu0 %v2230_v30  ;;  %v258_v38 = vld [vmem:[#allocation2 + $0x508] sm:$0xff]  ;;  %v537_v39 = vld [vmem:[#allocation2 + $0xdc0] sm:$0xff] }
 0x121   :  { %1269 = vmatmul.f32.vlgmr.msrb.gmra.mxu1 %v2232_v31  ;;  %1313 = vmatpush.msra.mxu0 %v240_v40  ;;  %v105_v40 = vld [vmem:[#allocation2 + $0x40] sm:$0xff] }
 0x122   :  { %1333 = vmatpush.msra.mxu1 %v384_v41  ;;  %1355 = vmatpush.msra.mxu2 %v510_v42  ;;  %v249_v41 = vld [vmem:[#allocation2 + $0x4c0] sm:$0xff]  ;;  %v770_v42 = vpop.f32.mrf.mxu0 }
 0x123   :  { %1374 = vmatpush.msra.mxu3 %v663_v43  ;;  %1314 = vmatpush.msra.mxu0 %v231_v44  ;;  %v790_v43 = vpop.f32.mrf.mxu1  ;;  %v2280_v44 = vpop.f32.mrf.mxu2 }
 0x124   :  { %1334 = vmatpush.msra.mxu1 %v375_v45  ;;  %1356 = vmatpush.msra.mxu2 %v501_v46  ;;  %v2282_v45 = vpop.f32.mrf.mxu3 }
 0x125   :  { %1375 = vmatpush.msra.mxu3 %v654_v47  ;;  %1315 = vmatpush.msra.mxu0 %v222_v49 }
 0x126   :  { %1335 = vmatpush.msra.mxu1 %v366_v50  ;;  %1357 = vmatpush.msra.mxu2 %v492_v51 }
 0x127   :  { %1376 = vmatpush.msra.mxu3 %v645_v53  ;;  %1316 = vmatpush.msra.mxu0 %v213_v54 }
 0x128   :  { %1336 = vmatpush.msra.mxu1 %v357_v55  ;;  %1358 = vmatpush.msra.mxu2 %v483_v56 }
 0x129   :  { %1377 = vmatpush.msra.mxu3 %v636_v57  ;;  %1317 = vmatpush.msra.mxu0 %v204_v58 }
 0x12a   :  { %1337 = vmatpush.msra.mxu1 %v348_v59  ;;  %1359 = vmatpush.msra.mxu2 %v474_v60 }
 0x12b   :  { %1378 = vmatpush.msra.mxu3 %v627_v61  ;;  %1318 = vmatpush.msra.mxu0 %v195_v62  ;;  %v2286_v46 = vpop.f32.mrf.mxu1  ;;  %v2288_v47 = vpop.f32.mrf.mxu2 }
 0x12c   :  { %1338 = vmatpush.msra.mxu1 %v339_v63  ;;  %1360 = vmatpush.msra.mxu2 %v465_v0  ;;  %v2290_v49 = vpop.f32.mrf.mxu3  ;;  %v1412_v63 = vld [vmem:[%s2355_s2] sm:$0xff]  ;;  %v2159_v0 = vmov 0  }
 0x12d   :  { %1379 = vmatpush.msra.mxu3 %v618_v1  ;;  %1319 = vmatpush.msra.mxu0 %v186_v2 }
 0x12e   :  { %1339 = vmatpush.msra.mxu1 %v330_v3  ;;  %1361 = vmatpush.msra.mxu2 %v456_v4 }
 0x12f   :  { %1380 = vmatpush.msra.mxu3 %v609_v5  ;;  %1320 = vmatpush.msra.mxu0 %v177_v6  ;;  %v1413_v5 = vld [vmem:[%s2355_s2 + $0x8] sm:$0xff]  ;;  %v1594_v6 = vld [vmem:[#allocation4 + $0x438] sm:$0xff] }
 0x130   :  { %1340 = vmatpush.msra.mxu1 %v321_v8  ;;  %1362 = vmatpush.msra.mxu2 %v447_v10  ;;  %v1585_v8 = vld [vmem:[#allocation4 + $0x3f0] sm:$0xff] }
 0x131   :  { %1381 = vmatpush.msra.mxu3 %v600_v11  ;;  %1321 = vmatpush.msra.mxu0 %v168_v12  ;;  %v1576_v12 = vld [vmem:[#allocation4 + $0x3a8] sm:$0xff] }
 0x132   :  { %1341 = vmatpush.msra.mxu1 %v312_v14  ;;  %1363 = vmatpush.msra.mxu2 %v438_v15  ;;  %v1595_v14 = vld [vmem:[#allocation4 + $0x440] sm:$0xff]  ;;  %v1596_v15 = vld [vmem:[#allocation4 + $0x448] sm:$0xff] }
 0x133   :  { %1382 = vmatpush.msra.mxu3 %v591_v16  ;;  %1322 = vmatpush.msra.mxu0 %v159_v17  ;;  %v950_v50 = vpop.f32.mrf.mxu1  ;;  %v970_v51 = vpop.f32.mrf.mxu2 }
 0x134   :  { %1342 = vmatpush.msra.mxu1 %v303_v18  ;;  %1364 = vmatpush.msra.mxu2 %v429_v19  ;;  %v1567_v19 = vld [vmem:[#allocation4 + $0x360] sm:$0xff] }
 0x135   :  { %1383 = vmatpush.msra.mxu3 %v582_v48  ;;  %1323 = vmatpush.msra.mxu0 %v150_v20  ;;  %v1586_v48 = vld [vmem:[#allocation4 + $0x3f8] sm:$0xff]  ;;  %v1587_v20 = vld [vmem:[#allocation4 + $0x400] sm:$0xff] }
 0x136   :  { %1343 = vmatpush.msra.mxu1 %v294_v21  ;;  %1365 = vmatpush.msra.mxu2 %v420_v22  ;;  %v791_v21 = vadd.f32 %v790_v43, %v770_v42  ;;  %v1577_v22 = vld [vmem:[#allocation4 + $0x3b0] sm:$0xff] }
 0x137   :  { %1384 = vmatpush.msra.mxu3 %v573_v23  ;;  %1324 = vmatpush.msra.mxu0 %v141_v52 }
 0x138   :  { %1344 = vmatpush.msra.mxu1 %v285_v24  ;;  %1366 = vmatpush.msra.mxu2 %v411_v25  ;;  %v1558_v24 = vld [vmem:[#allocation4 + $0x318] sm:$0xff] }
 0x139   :  { %1385 = vmatpush.msra.mxu3 %v564_v26  ;;  %1325 = vmatpush.msra.mxu0 %v132_v27  ;;  %v1578_v25 = vld [vmem:[#allocation4 + $0x3b8] sm:$0xff]  ;;  %v1568_v27 = vld [vmem:[#allocation4 + $0x368] sm:$0xff] }
 0x13a   :  { %1345 = vmatpush.msra.mxu1 %v276_v28  ;;  %1367 = vmatpush.msra.mxu2 %v402_v29  ;;  %v1569_v28 = vld [vmem:[#allocation4 + $0x370] sm:$0xff] }
 0x13b   :  { %1386 = vmatpush.msra.mxu3 %v555_v32  ;;  %1326 = vmatpush.msra.mxu0 %v123_v33 }
 0x13c   :  { %1346 = vmatpush.msra.mxu1 %v267_v34  ;;  %1368 = vmatpush.msra.mxu2 %v393_v35  ;;  %v1549_v35 = vld [vmem:[#allocation4 + $0x2d0] sm:$0xff] }
 0x13d   :  { %1387 = vmatpush.msra.mxu3 %v546_v36  ;;  %1369 = vmatmul.f32.vlgmr.msra.gmra.mxu2 %v2254_v7  ;;  %v2284_v7 = vpop.f32.mrf.mxu0  ;;  %v811_v36 = vadd.f32 %v2280_v44, %v791_v21  ;;  %v1477_v21 = vld [vmem:[#allocation4 + $0x90] sm:$0xff] }
 0x13e   :  { %1327 = vmatpush.msra.mxu0 %v114_v37  ;;  %1347 = vmatpush.msra.mxu1 %v258_v38 }
 0x13f   :  { %1388 = vmatpush.msra.mxu3 %v537_v39  ;;  %2072 = vset.pattern.permute.xlu0 %v2159_v0  ;;  %v1559_v39 = vld [vmem:[#allocation4 + $0x320] sm:$0xff] }
 0x140   :  { %1389 = vmatmul.f32.vlgmr.msra.gmra.mxu3 %v2259_v13  ;;  %1328 = vmatpush.msra.mxu0 %v105_v40  ;;  %v1560_v40 = vld [vmem:[#allocation4 + $0x328] sm:$0xff] }
 0x141   :  { %1348 = vmatpush.msra.mxu1 %v249_v41  ;;  %1329 = vmatmul.f32.vlgmr.msra.gmra.mxu0 %v2230_v30  ;;  %v2292_v30 = vpop.f32.mrf.mxu3  ;;  %v871_v41 = vadd.f32 %v2286_v46, %v2284_v7  ;;  %v1541_v7 = vld [vmem:[#allocation4 + $0x290] sm:$0xff]  ;;  %v1542_v46 = vld [vmem:[#allocation4 + $0x298] sm:$0xff] }
 0x142   :  { %1349 = vmatmul.f32.vlgmr.msra.gmra.mxu1 %v2232_v31  ;;  %2073 = vset.pattern.permute.xlu1 %v2159_v0  ;;  %v1533_v0 = vld [vmem:[#allocation4 + $0x250] sm:$0xff] }
 0x143   :  { %1416 = vperm.xlu0 %2072, %v1412_v63   ;;  %1603 = vmatpush.msrb.mxu1 %v1594_v6 }
 0x144   :  { %1626 = vmatpush.msrb.mxu2 %v1595_v14  ;;  %1649 = vmatpush.msrb.mxu3 %v1596_v15  ;;  %v1495_v14 = vld [vmem:[#allocation4 + $0x120] sm:$0xff]  ;;  %v1410_v15 = vld [vmem:[%s2354_s1] sm:$0xff] }
 0x145   :  { %v930_v13 = vpop.f32.mrf.mxu0  ;;  %1604 = vmatpush.msrb.mxu1 %v1585_v8 }
 0x146   :  { %v951_v16 = vadd.f32 %v950_v50, %v930_v13  ;;  %1627 = vmatpush.msrb.mxu2 %v1586_v48  ;;  %1650 = vmatpush.msrb.mxu3 %v1587_v20  ;;  %v1540_v13 = vld [vmem:[#allocation4 + $0x288] sm:$0xff] }
 0x147   :  { %1605 = vmatpush.msrb.mxu1 %v1576_v12  ;;  %v1496_v48 = vld [vmem:[#allocation4 + $0x128] sm:$0xff] }
 0x148   :  { %v971_v29 = vadd.f32 %v970_v51, %v951_v16  ;;  %1628 = vmatpush.msrb.mxu2 %v1577_v22  ;;  %1651 = vmatpush.msrb.mxu3 %v1578_v25  ;;  %v1550_v51 = vld [vmem:[#allocation4 + $0x2d8] sm:$0xff]  ;;  %v1588_v20 = vld [vmem:[#allocation4 + $0x408] sm:$0xff]  ;;  %v1497_v22 = vld [vmem:[#allocation4 + $0x130] sm:$0xff] }
 0x149   :  { %1606 = vmatpush.msrb.mxu1 %v1567_v19  ;;  %v1506_v19 = vld [vmem:[#allocation4 + $0x178] sm:$0xff] }
 0x14a   :  { %1629 = vmatpush.msrb.mxu2 %v1568_v27  ;;  %1652 = vmatpush.msrb.mxu3 %v1569_v28  ;;  %v1478_v25 = vld [vmem:[#allocation4 + $0x98] sm:$0xff]  ;;  %v1459_v27 = vld [vmem:[#allocation4] sm:$0xff] }
 0x14b   :  { %1421 = vperm.xlu0 %2072, %v1413_v5   ;;  %1607 = vmatpush.msrb.mxu1 %v1558_v24  ;;  %v1513_v5 = vld [vmem:[#allocation4 + $0x1b0] sm:$0xff]  ;;  %v1468_v24 = vld [vmem:[#allocation4 + $0x48] sm:$0xff]  ;;  %v1411_v28 = vld [vmem:[%s2354_s1 + $0x8] sm:$0xff] }
 0x14c   :  { %1630 = vmatpush.msrb.mxu2 %v1559_v39  ;;  %1653 = vmatpush.msrb.mxu3 %v1560_v40  ;;  %v1460_v39 = vld [vmem:[#allocation4 + $0x8] sm:$0xff]  ;;  %v1543_v40 = vld [vmem:[#allocation4 + $0x2a0] sm:$0xff] }
 0x14d   :  { %1608 = vmatpush.msrb.mxu1 %v1549_v35  ;;  %v1469_v35 = vld [vmem:[#allocation4 + $0x50] sm:$0xff] }
 0x14e   :  { %1631 = vmatpush.msrb.mxu2 %v1550_v51  ;;  %v1562_v51 = vld [vmem:[#allocation4 + $0x338] sm:$0xff] }
 0x14f   :  { %v1010_v31 = vpop.f32.mrf.mxu0  ;;  %1609 = vmatpush.msrb.mxu1 %v1540_v13  ;;  %v1534_v13 = vld [vmem:[#allocation4 + $0x258] sm:$0xff] }
 0x150   :  { %v1030_v53 = vpop.f32.mrf.mxu1  ;;  %v2294_v54 = vpop.f32.mrf.mxu2  ;;  %1632 = vmatpush.msrb.mxu2 %v1541_v7  ;;  %v1526_v7 = vld [vmem:[#allocation4 + $0x218] sm:$0xff] }
 0x151   :  { %v1031_v32 = vadd.f32 %v1030_v53, %v1010_v31  ;;  %v1551_v31 = vld [vmem:[#allocation4 + $0x2e0] sm:$0xff]  ;;  %v991_v53 = vadd.f32 %v2292_v30, %v971_v29  ;;  %v1522_v30 = vld [vmem:[#allocation4 + $0x1f8] sm:$0xff] }
 0x152   :  { %1654 = vmatpush.msrb.mxu3 %v1551_v31  ;;  %v1598_v29 = vld [vmem:[#allocation4 + $0x458] sm:$0xff]  ;;  %v1525_v31 = vld [vmem:[#allocation4 + $0x210] sm:$0xff] }
 0x153   :  { %v2296_v55 = vpop.f32.mrf.mxu3  ;;  %v1051_v44 = vadd.f32 %v2294_v54, %v1031_v32  ;;  %v1532_v54 = vld [vmem:[#allocation4 + $0x248] sm:$0xff]  ;;  %v1561_v32 = vld [vmem:[#allocation4 + $0x330] sm:$0xff] }
 0x154   :  { %1655 = vmatpush.msrb.mxu3 %v1542_v46  ;;  %1633 = vmatpush.msrb.mxu2 %v1532_v54  ;;  %v1489_v46 = vld [vmem:[#allocation4 + $0xf0] sm:$0xff]  ;;  %v1591_v54 = vld [vmem:[#allocation4 + $0x420] sm:$0xff] }
 0x156   :  { %1656 = vmatpush.msrb.mxu3 %v1533_v0  ;;  %v1592_v0 = vld [vmem:[#allocation4 + $0x428] sm:$0xff] }
 0x159   :  { %v1090_v56 = vpop.f32.mrf.mxu0 }
 0x15a   :  { %v1110_v57 = vpop.f32.mrf.mxu1  ;;  %v1130_v58 = vpop.f32.mrf.mxu2 }
 0x15b   :  { %v1111_v11 = vadd.f32 %v1110_v57, %v1090_v56 }
 0x15d   :  { %v1150_v59 = vpop.f32.mrf.mxu3  ;;  %v1131_v23 = vadd.f32 %v1130_v58, %v1111_v11  ;;  %v1531_v58 = vld [vmem:[#allocation4 + $0x240] sm:$0xff] }
 0x15e   :  { %1610 = vmatpush.msrb.mxu1 %v1531_v58  ;;  %v1515_v11 = vld [vmem:[#allocation4 + $0x1c0] sm:$0xff] }
 0x15f   :  { %v1151_v42 = vadd.f32 %v1150_v59, %v1131_v23  ;;  %v831_v59 = vadd.f32 %v2282_v45, %v811_v36  ;;  %v1523_v45 = vld [vmem:[#allocation4 + $0x200] sm:$0xff]  ;;  %v1552_v36 = vld [vmem:[#allocation4 + $0x2e8] sm:$0xff] }
 0x160   :  { %1611 = vmatpush.msrb.mxu1 %v1522_v30  ;;  %1634 = vmatpush.msrb.mxu2 %v1523_v45  ;;  %v1487_v23 = vld [vmem:[#allocation4 + $0xe0] sm:$0xff]  ;;  %v1590_v30 = vld [vmem:[#allocation4 + $0x418] sm:$0xff]  ;;  %v1508_v45 = vld [vmem:[#allocation4 + $0x188] sm:$0xff] }
 0x161   :  { %v1535_v58 = vld [vmem:[#allocation4 + $0x260] sm:$0xff] }
 0x162   :  { %1612 = vmatpush.msrb.mxu1 %v1513_v5  ;;  %v1583_v5 = vld [vmem:[#allocation4 + $0x3e0] sm:$0xff] }
 0x193   :  { %v1170_v60 = vpop.f32.mrf.mxu0 }
 0x194   :  { %v1190_v61 = vpop.f32.mrf.mxu1  ;;  %v1210_v62 = vpop.f32.mrf.mxu2 }
 0x195   :  { %v1191_v52 = vadd.f32 %v1190_v61, %v1170_v60  ;;  %v891_v61 = vadd.f32 %v2288_v47, %v871_v41  ;;  %v1524_v47 = vld [vmem:[#allocation4 + $0x208] sm:$0xff]  ;;  %v1461_v41 = vld [vmem:[#allocation4 + $0x10] sm:$0xff] }
 0x196   :  { %1657 = vmatpush.msrb.mxu3 %v1524_v47  ;;  %v1572_v47 = vld [vmem:[#allocation4 + $0x388] sm:$0xff] }
 0x197   :  { %v2301_v1 = vpop.f32.mrf.mxu3  ;;  %v1211_v43 = vadd.f32 %v1210_v62, %v1191_v52  ;;  %v1400_v62 = vrot.slane %v1151_v42, 4  ;;  %v911_v6 = vadd.f32 %v2290_v49, %v891_v61  ;;  %v1505_v49 = vld [vmem:[#allocation4 + $0x170] sm:$0xff]  ;;  %v1579_v52 = vld [vmem:[#allocation4 + $0x3c0] sm:$0xff] }
 0x198   :  { %1658 = vmatpush.msrb.mxu3 %v1515_v11  ;;  %v1571_v42 = vld [vmem:[#allocation4 + $0x380] sm:$0xff]  ;;  %v1565_v11 = vld [vmem:[#allocation4 + $0x350] sm:$0xff] }
 0x199   :  { %v1231_v63 = vadd.f32 %v2301_v1, %v1211_v43  ;;  %v1394_v1 = vrot.slane %v831_v59, 4  ;;  %v1599_v43 = vld [vmem:[#allocation4 + $0x460] sm:$0xff]  ;;  %v1480_v59 = vld [vmem:[#allocation4 + $0xa8] sm:$0xff] }
 0x19a   :  { %1659 = vmatpush.msrb.mxu3 %v1506_v19  ;;  %v1471_v61 = vld [vmem:[#allocation4 + $0x60] sm:$0xff] }
 0x19b   :  { %v1406_v16 = vsel %vm1405_vm0, %v2257_v9, %v1394_v1  ;;  %v1488_v9 = vld [vmem:[#allocation4 + $0xe8] sm:$0xff]  ;;  %v1573_v1 = vld [vmem:[#allocation4 + $0x390] sm:$0xff]  ;;  %v1547_v19 = vld [vmem:[#allocation4 + $0x2c0] sm:$0xff] }
 0x19c   :  { %1660 = vmatpush.msrb.mxu3 %v1497_v22  ;;  %v1538_v22 = vld [vmem:[#allocation4 + $0x278] sm:$0xff] }
 0x19d   :  { %v1250_v2 = vpop.f32.mrf.mxu0 }
 0x19e   :  { %v1270_v3 = vpop.f32.mrf.mxu1  ;;  %v1290_v10 = vpop.f32.mrf.mxu2  ;;  %1661 = vmatpush.msrb.mxu3 %v1488_v9  ;;  %v1529_v9 = vld [vmem:[#allocation4 + $0x230] sm:$0xff] }
 0x19f   :  { %v1271_v4 = vadd.f32 %v1270_v3, %v1250_v2  ;;  %v1397_v2 = vrot.slane %v991_v53, 4  ;;  %v1071_v3 = vadd.f32 %v2296_v55, %v1051_v44  ;;  %v1514_v55 = vld [vmem:[#allocation4 + $0x1b8] sm:$0xff]  ;;  %v1553_v53 = vld [vmem:[#allocation4 + $0x2f0] sm:$0xff]  ;;  %v1516_v44 = vld [vmem:[#allocation4 + $0x1c8] sm:$0xff] }
 0x1a0   :  { %1635 = vmatpush.msrb.mxu2 %v1514_v55  ;;  %v1564_v55 = vld [vmem:[#allocation4 + $0x348] sm:$0xff] }
 0x1a1   :  { %v1291_v17 = vadd.f32 %v1290_v10, %v1271_v4  ;;  %v1310_v18 = vpop.f32.mrf.mxu3  ;;  %v1408_v8 = vsel %vm1405_vm0, %v1071_v3, %v1400_v62  ;;  %v1504_v10 = vld [vmem:[#allocation4 + $0x168] sm:$0xff]  ;;  %v1407_v12 = vsel %vm1405_vm0, %v911_v6, %v1397_v2  ;;  %v1462_v62 = vld [vmem:[#allocation4 + $0x18] sm:$0xff]  ;;  %v1517_v2 = vld [vmem:[#allocation4 + $0x1d0] sm:$0xff] }
 0x1a2   :  { %1613 = vmatpush.msrb.mxu1 %v1504_v10  ;;  %1636 = vmatpush.msrb.mxu2 %v1505_v49  ;;  %v1581_v3 = vld [vmem:[#allocation4 + $0x3d0] sm:$0xff]  ;;  %v1574_v6 = vld [vmem:[#allocation4 + $0x398] sm:$0xff]  ;;  %v1563_v10 = vld [vmem:[#allocation4 + $0x340] sm:$0xff] }
 0x1a3   :  { %v1311_v33 = vadd.f32 %v1310_v18, %v1291_v17  ;;  %v1597_v17 = vld [vmem:[#allocation4 + $0x450] sm:$0xff]  ;;  %v1486_v18 = vld [vmem:[#allocation4 + $0xd8] sm:$0xff]  ;;  %v1556_v49 = vld [vmem:[#allocation4 + $0x308] sm:$0xff] }
 0x1a4   :  { %1614 = vmatpush.msrb.mxu1 %v1495_v14  ;;  %1637 = vmatpush.msrb.mxu2 %v1496_v48  ;;  %v1554_v14 = vld [vmem:[#allocation4 + $0x2f8] sm:$0xff]  ;;  %v1472_v48 = vld [vmem:[#allocation4 + $0x68] sm:$0xff] }
 0x1a5   :  { %v1403_v56 = vrot.slane %v1311_v33, 4  ;;  %v1479_v33 = vld [vmem:[#allocation4 + $0xa0] sm:$0xff] }
 0x1a6   :  { %1615 = vmatpush.msrb.mxu1 %v1486_v18  ;;  %1638 = vmatpush.msrb.mxu2 %v1487_v23  ;;  %v1546_v18 = vld [vmem:[#allocation4 + $0x2b8] sm:$0xff]  ;;  %v1463_v23 = vld [vmem:[#allocation4 + $0x20] sm:$0xff] }
 0x1a7   :  { %v1409_v4 = vsel %vm1405_vm0, %v1231_v63, %v1403_v56  ;;  %1662 = vmatpush.msrb.mxu3 %v1479_v33  ;;  %v1544_v56 = vld [vmem:[#allocation4 + $0x2a8] sm:$0xff]  ;;  %v1601_v63 = vld [vmem:[#allocation4 + $0x470] sm:$0xff] }
 0x1a8   :  { %1616 = vmatpush.msrb.mxu1 %v1477_v21  ;;  %1639 = vmatpush.msrb.mxu2 %v1478_v25  ;;  %v1537_v21 = vld [vmem:[#allocation4 + $0x270] sm:$0xff]  ;;  %v1518_v25 = vld [vmem:[#allocation4 + $0x1d8] sm:$0xff]  ;;  %v1500_v33 = vld [vmem:[#allocation4 + $0x148] sm:$0xff] }
 0x1aa   :  { %1617 = vmatpush.msrb.mxu1 %v1468_v24  ;;  %1640 = vmatpush.msrb.mxu2 %v1469_v35  ;;  %v1528_v24 = vld [vmem:[#allocation4 + $0x228] sm:$0xff]  ;;  %v1502_v35 = vld [vmem:[#allocation4 + $0x158] sm:$0xff] }
 0x1ac   :  { %1618 = vmatpush.msrb.mxu1 %v1459_v27  ;;  %1641 = vmatpush.msrb.mxu2 %v1460_v39  ;;  %v1520_v27 = vld [vmem:[#allocation4 + $0x1e8] sm:$0xff]  ;;  %v1482_v39 = vld [vmem:[#allocation4 + $0xb8] sm:$0xff] }
 0x1ae   :  { %1695 = vmatpush.msra.mxu1 %v1598_v29  ;;  %1718 = vmatpush.msra.mxu2 %v1599_v43  ;;  %v1510_v29 = vld [vmem:[#allocation4 + $0x198] sm:$0xff] }
 0x1af   :  { %v1474_v43 = vld [vmem:[#allocation4 + $0x78] sm:$0xff] }
 0x1b0   :  { %1719 = vmatpush.msra.mxu2 %v1590_v30  ;;  %v1566_v30 = vld [vmem:[#allocation4 + $0x358] sm:$0xff] }
 0x1b2   :  { %1720 = vmatpush.msra.mxu2 %v1581_v3  ;;  %v1530_v3 = vld [vmem:[#allocation4 + $0x238] sm:$0xff] }
 0x1b4   :  { %1721 = vmatpush.msra.mxu2 %v1572_v47  ;;  %v1494_v47 = vld [vmem:[#allocation4 + $0x118] sm:$0xff] }
 0x1b6   :  { %1722 = vmatpush.msra.mxu2 %v1563_v10 }
 0x1b8   :  { %1723 = vmatpush.msra.mxu2 %v1554_v14 }
 0x1be   :  { %v1330_v26 = vpop.f32.mrf.mxu0 }
 0x1bf   :  { %v1350_v34 = vpop.f32.mrf.mxu1 }
 0x1c0   :  { %v1351_v37 = vadd.f32 %v1350_v34, %v1330_v26  ;;  %v1370_v38 = vpop.f32.mrf.mxu2  ;;  %v1570_v26 = vld [vmem:[#allocation4 + $0x378] sm:$0xff]  ;;  %v1589_v34 = vld [vmem:[#allocation4 + $0x410] sm:$0xff] }
 0x1c1   :  { %1696 = vmatpush.msra.mxu1 %v1589_v34  ;;  %v1501_v34 = vld [vmem:[#allocation4 + $0x150] sm:$0xff] }
 0x1c2   :  { %v1371_v50 = vadd.f32 %v1370_v38, %v1351_v37  ;;  %v1470_v37 = vld [vmem:[#allocation4 + $0x58] sm:$0xff]  ;;  %v1580_v38 = vld [vmem:[#allocation4 + $0x3c8] sm:$0xff] }
 0x1c3   :  { %v1390_v57 = vpop.f32.mrf.mxu3  ;;  %1663 = vmatpush.msrb.mxu3 %v1470_v37  ;;  %1697 = vmatpush.msra.mxu1 %v1580_v38  ;;  %v1492_v37 = vld [vmem:[#allocation4 + $0x108] sm:$0xff]  ;;  %v1493_v38 = vld [vmem:[#allocation4 + $0x110] sm:$0xff] }
 0x1c4   :  { %v1391_v60 = vadd.f32 %v1390_v57, %v1371_v50  ;;  %v1600_v50 = vld [vmem:[#allocation4 + $0x468] sm:$0xff]  ;;  %v1507_v57 = vld [vmem:[#allocation4 + $0x180] sm:$0xff] }
 0x1c5   :  { %1664 = vmatpush.msrb.mxu3 %v1461_v41  ;;  %1698 = vmatpush.msra.mxu1 %v1571_v42  ;;  %v1484_v41 = vld [vmem:[#allocation4 + $0xc8] sm:$0xff]  ;;  %v1473_v42 = vld [vmem:[#allocation4 + $0x70] sm:$0xff] }
 0x1c6   :  { %2058 = vmatpush.msk.msrb.mxu0 %vm1405_vm0, %v1391_v60  ;;  %v1498_v60 = vld [vmem:[#allocation4 + $0x138] sm:$0xff] }
 0x1c7   :  { %1741 = vmatpush.msra.mxu3 %v1600_v50  ;;  %1699 = vmatpush.msra.mxu1 %v1562_v51  ;;  %v1464_v50 = vld [vmem:[#allocation4 + $0x28] sm:$0xff]  ;;  %v1465_v51 = vld [vmem:[#allocation4 + $0x30] sm:$0xff] }
 0x1c8   :  { %1446 = vmatpush.msrb.mxu0 %v1409_v4  ;;  %v1582_v4 = vld [vmem:[#allocation4 + $0x3d8] sm:$0xff] }
 0x1c9   :  { %1700 = vmatpush.msra.mxu1 %v1553_v53  ;;  %1742 = vmatpush.msra.mxu3 %v1591_v54  ;;  %v1417_v53 = vpop.permute.xlu0 %1416  ;;  %v1557_v54 = vld [vmem:[#allocation4 + $0x310] sm:$0xff] }
 0x1ca   :  { %1447 = vmatpush.msrb.mxu0 %v1408_v8  ;;  %v1499_v8 = vld [vmem:[#allocation4 + $0x140] sm:$0xff] }
 0x1cb   :  { %1701 = vmatpush.msra.mxu1 %v1544_v56  ;;  %1743 = vmatpush.msra.mxu3 %v1582_v4  ;;  %v1521_v4 = vld [vmem:[#allocation4 + $0x1f0] sm:$0xff] }
 0x1cc   :  { %1448 = vmatpush.msrb.mxu0 %v1407_v12  ;;  %v1490_v12 = vld [vmem:[#allocation4 + $0xf8] sm:$0xff] }
 0x1cd   :  { %1702 = vmatpush.msra.mxu1 %v1535_v58  ;;  %1744 = vmatpush.msra.mxu3 %v1573_v1  ;;  %v1602_v58 = vld [vmem:[#allocation4 + $0x478] sm:$0xff]  ;;  %v1485_v1 = vld [vmem:[#allocation4 + $0xd0] sm:$0xff] }
 0x1ce   :  { %1449 = vmatpush.msrb.mxu0 %v1406_v16  ;;  %v1481_v16 = vld [vmem:[#allocation4 + $0xb0] sm:$0xff] }
 0x1cf   :  { %2059 = vmatmul.msk.f32.vlgmr.msrb.gmra.mxu0 %vm1424_vm1, %v1410_v15  ;;  %1703 = vmatpush.msra.mxu1 %v1526_v7  ;;  %v1555_v15 = vld [vmem:[#allocation4 + $0x300] sm:$0xff] }
 0x1d0   :  { %1672 = vmatpush.msra.mxu0 %v1597_v17  ;;  %1745 = vmatpush.msra.mxu3 %v1564_v55  ;;  %v1545_v17 = vld [vmem:[#allocation4 + $0x2b0] sm:$0xff] }
 0x1d1   :  { %1704 = vmatpush.msra.mxu1 %v1517_v2  ;;  %1724 = vmatpush.msra.mxu2 %v1545_v17  ;;  %v1422_v7 = vpop.permute.xlu0 %1421  ;;  %v1539_v2 = vld [vmem:[#allocation4 + $0x280] sm:$0xff] }
 0x1d2   :  { %1673 = vmatpush.msra.mxu0 %v1588_v20  ;;  %1746 = vmatpush.msra.mxu3 %v1555_v15  ;;  %v1536_v20 = vld [vmem:[#allocation4 + $0x268] sm:$0xff] }
 0x1d3   :  { %1705 = vmatpush.msra.mxu1 %v1508_v45  ;;  %1725 = vmatpush.msra.mxu2 %v1536_v20  ;;  %v1503_v45 = vld [vmem:[#allocation4 + $0x160] sm:$0xff] }
 0x1d4   :  { %1674 = vmatpush.msra.mxu0 %v1579_v52  ;;  %1747 = vmatpush.msra.mxu3 %v1546_v18  ;;  %v1527_v52 = vld [vmem:[#allocation4 + $0x220] sm:$0xff] }
 0x1d5   :  { %1706 = vmatpush.msra.mxu1 %v1499_v8  ;;  %1726 = vmatpush.msra.mxu2 %v1527_v52  ;;  %v1467_v8 = vld [vmem:[#allocation4 + $0x40] sm:$0xff] }
 0x1d6   :  { %1675 = vmatpush.msra.mxu0 %v1570_v26  ;;  %1748 = vmatpush.msra.mxu3 %v1537_v21  ;;  %v1519_v26 = vld [vmem:[#allocation4 + $0x1e0] sm:$0xff] }
 0x1d7   :  { %2060 = vmatmul.msk.f32.gmra.mxu0 %vm1424_vm1, %v1411_v28  ;;  %1707 = vmatpush.msra.mxu1 %v1490_v12  ;;  %v1509_v28 = vld [vmem:[#allocation4 + $0x190] sm:$0xff] }
 0x1d8   :  { %1676 = vmatpush.msra.mxu0 %v1561_v32  ;;  %1749 = vmatpush.msra.mxu3 %v1528_v24  ;;  %v1511_v32 = vld [vmem:[#allocation4 + $0x1a0] sm:$0xff]  ;;  %v1864_v24 = vld [vmem:[%s2359_s6] sm:$0x7] }
 0x1d9   :  { %1708 = vmatpush.msra.mxu1 %v1481_v16  ;;  %1727 = vmatpush.msra.mxu2 %v1518_v25 }
 0x1da   :  { %1677 = vmatpush.msra.mxu0 %v1552_v36  ;;  %1750 = vmatpush.msra.mxu3 %v1519_v26  ;;  %v1491_v36 = vld [vmem:[#allocation4 + $0x100] sm:$0xff] }
 0x1db   :  { %1709 = vmatpush.msra.mxu1 %v1472_v48  ;;  %1728 = vmatpush.msra.mxu2 %v1509_v28  ;;  %v1811_v26 = vld [vmem:[%s2356_s3 + $0x8] sm:$0xff] }
 0x1dc   :  { %1678 = vmatpush.msra.mxu0 %v1543_v40  ;;  %1751 = vmatpush.msra.mxu3 %v1510_v29  ;;  %v1483_v40 = vld [vmem:[#allocation4 + $0xc0] sm:$0xff]  ;;  %v1956_v29 = vld [vmem:[#allocation6 + $0x1f0] sm:$0xff] }
 0x1dd   :  { %1710 = vmatpush.msra.mxu1 %v1463_v23  ;;  %1729 = vmatpush.msra.mxu2 %v1500_v33  ;;  %v1954_v28 = vld [vmem:[#allocation6 + $0x1e0] sm:$0xff] }
 0x1de   :  { %1679 = vmatpush.msra.mxu0 %v1534_v13  ;;  %1752 = vmatpush.msra.mxu3 %v1501_v34  ;;  %v1475_v13 = vld [vmem:[#allocation4 + $0x80] sm:$0xff]  ;;  %v1952_v34 = vld [vmem:[#allocation6 + $0x1d0] sm:$0xff] }
 0x1df   :  { %1730 = vmatpush.msra.mxu2 %v1491_v36  ;;  %v1950_v33 = vld [vmem:[#allocation6 + $0x1c0] sm:$0xff] }
 0x1e0   :  { %1680 = vmatpush.msra.mxu0 %v1525_v31  ;;  %1753 = vmatpush.msra.mxu3 %v1492_v37  ;;  %v1466_v31 = vld [vmem:[#allocation4 + $0x38] sm:$0xff]  ;;  %v1946_v36 = vld [vmem:[#allocation6 + $0x1a0] sm:$0xff]  ;;  %v1948_v37 = vld [vmem:[#allocation6 + $0x1b0] sm:$0xff] }
 0x1e1   :  { %1731 = vmatpush.msra.mxu2 %v1482_v39  ;;  %v1942_v39 = vld [vmem:[#allocation6 + $0x180] sm:$0xff] }
 0x1e2   :  { %1681 = vmatpush.msra.mxu0 %v1516_v44  ;;  %1754 = vmatpush.msra.mxu3 %v1483_v40  ;;  %v1944_v40 = vld [vmem:[#allocation6 + $0x190] sm:$0xff] }
 0x1e3   :  { %1732 = vmatpush.msra.mxu2 %v1473_v42  ;;  %v1938_v42 = vld [vmem:[#allocation6 + $0x160] sm:$0xff] }
 0x1e4   :  { %1682 = vmatpush.msra.mxu0 %v1507_v57  ;;  %1755 = vmatpush.msra.mxu3 %v1474_v43  ;;  %v1940_v43 = vld [vmem:[#allocation6 + $0x170] sm:$0xff] }
 0x1e5   :  { %1733 = vmatpush.msra.mxu2 %v1464_v50  ;;  %v1934_v50 = vld [vmem:[#allocation6 + $0x140] sm:$0xff] }
 0x1e6   :  { %1683 = vmatpush.msra.mxu0 %v1498_v60  ;;  %1756 = vmatpush.msra.mxu3 %v1465_v51  ;;  %v1593_v60 = vld [vmem:[#allocation4 + $0x430] sm:$0xff] }
 0x1e7   :  { %v1936_v51 = vld [vmem:[#allocation6 + $0x150] sm:$0xff] }
 0x1e8   :  { %1684 = vmatpush.msra.mxu0 %v1489_v46 }
 0x1ea   :  { %1685 = vmatpush.msra.mxu0 %v1480_v59  ;;  %v1584_v59 = vld [vmem:[#allocation4 + $0x3e8] sm:$0xff] }
 0x1ec   :  { %1686 = vmatpush.msra.mxu0 %v1471_v61 }
 0x1ee   :  { %1687 = vmatpush.msra.mxu0 %v1462_v62  ;;  %v1575_v62 = vld [vmem:[#allocation4 + $0x3a0] sm:$0xff] }
 0x1f0   :  { %1764 = vmatpush.msrb.mxu0 %v1601_v63 }
 0x1f2   :  { %1765 = vmatpush.msrb.mxu0 %v1592_v0  ;;  %v1548_v0 = vld [vmem:[#allocation4 + $0x2c8] sm:$0xff] }
 0x1f4   :  { %1766 = vmatpush.msrb.mxu0 %v1583_v5  ;;  %v1512_v5 = vld [vmem:[#allocation4 + $0x1a8] sm:$0xff] }
 0x1f6   :  { %1767 = vmatpush.msrb.mxu0 %v1574_v6  ;;  %v1476_v6 = vld [vmem:[#allocation4 + $0x88] sm:$0xff] }
 0x1f8   :  { %1768 = vmatpush.msrb.mxu0 %v1565_v11 }
 0x1fa   :  { %1769 = vmatpush.msrb.mxu0 %v1556_v49 }
 0x1fc   :  { %1770 = vmatpush.msrb.mxu0 %v1547_v19 }
 0x1fe   :  { %1771 = vmatpush.msrb.mxu0 %v1538_v22  ;;  %v1812_v22 = vld [vmem:[%s2357_s4] sm:$0xff] }
 0x1ff   :  { %1815 = vperm.xlu1 %2073, %v1812_v22   ;;  %v1927_v22 = vld [vmem:[#allocation6 + $0x108] sm:$0xff] }
 0x200   :  { %1772 = vmatpush.msrb.mxu0 %v1529_v9 }
 0x202   :  { %1773 = vmatpush.msrb.mxu0 %v1520_v27  ;;  %v1810_v27 = vld [vmem:[%s2356_s3] sm:$0xff] }
 0x204   :  { %1774 = vmatpush.msrb.mxu0 %v1511_v32  ;;  %v1957_v32 = vld [vmem:[#allocation6 + $0x1f8] sm:$0xff] }
 0x206   :  { %1775 = vmatpush.msrb.mxu0 %v1502_v35  ;;  %v1953_v35 = vld [vmem:[#allocation6 + $0x1d8] sm:$0xff] }
 0x207   :  { %1867 = vperm.xlu1 %2073, %v1864_v24   ;;  %v1915_v24 = vld [vmem:[#allocation6 + $0xa8] sm:$0xff] }
 0x208   :  { %1776 = vmatpush.msrb.mxu0 %v1493_v38  ;;  %v1949_v38 = vld [vmem:[#allocation6 + $0x1b8] sm:$0xff] }
 0x20a   :  { %1777 = vmatpush.msrb.mxu0 %v1484_v41  ;;  %v1945_v41 = vld [vmem:[#allocation6 + $0x198] sm:$0xff] }
 0x20c   :  { %1778 = vmatpush.msrb.mxu0 %v1475_v13  ;;  %v1941_v13 = vld [vmem:[#allocation6 + $0x178] sm:$0xff] }
 0x20e   :  { %1779 = vmatpush.msrb.mxu0 %v1466_v31  ;;  %v1937_v31 = vld [vmem:[#allocation6 + $0x158] sm:$0xff] }
 0x24c   :  { %v1451_v44 = vpop.f32.mrf.mxu0 }
 0x24d   :  { %v1452_v56 = vadd.f32 %v1451_v44, %v1417_v53  ;;  %v1930_v53 = vld [vmem:[#allocation6 + $0x120] sm:$0xff]  ;;  %v1932_v44 = vld [vmem:[#allocation6 + $0x130] sm:$0xff] }
 0x24f   :  { %v1457_v57 = vmax.f32 %v1452_v56, 0.0  ;;  %v1933_v56 = vld [vmem:[#allocation6 + $0x138] sm:$0xff] }
 0x251   :  { %1619 = vmatmul.f32.vlgmr.msrb.gmra.mxu1 %v1457_v57  ;;  %1642 = vmatmul.f32.vlgmr.msrb.gmra.mxu2 %v1457_v57 }
 0x252   :  { %1665 = vmatmul.f32.vlgmr.msrb.gmra.mxu3 %v1457_v57  ;;  %1688 = vmatmul.f32.vlgmr.msra.gmra.mxu0 %v1457_v57 }
 0x253   :  { %1787 = vmatpush.msrb.mxu1 %v1602_v58  ;;  %1958 = vmatpush.msra.mxu0 %v1954_v28  ;;  %v1928_v58 = vld [vmem:[#allocation6 + $0x110] sm:$0xff]  ;;  %v1899_v28 = vld [vmem:[#allocation6 + $0x28] sm:$0xff] }
 0x254   :  { %v1454_v46 = vpop.f32.mrf.mxu0 }
 0x255   :  { %v1455_v61 = vadd.f32 %v1454_v46, %v1422_v7  ;;  %1788 = vmatpush.msrb.mxu1 %v1593_v60  ;;  %1959 = vmatpush.msra.mxu0 %v1950_v33  ;;  %v1929_v60 = vld [vmem:[#allocation6 + $0x118] sm:$0xff]  ;;  %v1922_v7 = vld [vmem:[#allocation6 + $0xe0] sm:$0xff]  ;;  %v1924_v46 = vld [vmem:[#allocation6 + $0xf0] sm:$0xff] }
 0x256   :  { %v1894_v33 = vld [vmem:[#allocation6] sm:$0xff] }
 0x257   :  { %v1458_v63 = vmax.f32 %v1455_v61, 0.0  ;;  %1789 = vmatpush.msrb.mxu1 %v1584_v59  ;;  %1960 = vmatpush.msra.mxu0 %v1946_v36  ;;  %v1925_v59 = vld [vmem:[#allocation6 + $0xf8] sm:$0xff]  ;;  %v1918_v61 = vld [vmem:[#allocation6 + $0xc0] sm:$0xff] }
 0x258   :  { %v1897_v36 = vld [vmem:[#allocation6 + $0x18] sm:$0xff] }
 0x259   :  { %1790 = vmatpush.msrb.mxu1 %v1575_v62  ;;  %1645 = vmatmul.f32.gmra.mxu2 %v1458_v63  ;;  %v1920_v62 = vld [vmem:[#allocation6 + $0xd0] sm:$0xff] }
 0x25a   :  { %1622 = vmatmul.f32.gmra.mxu1 %v1458_v63  ;;  %1668 = vmatmul.f32.gmra.mxu3 %v1458_v63 }
 0x25b   :  { %1691 = vmatmul.f32.gmra.mxu0 %v1458_v63  ;;  %1791 = vmatpush.msrb.mxu1 %v1566_v30  ;;  %v1914_v30 = vld [vmem:[#allocation6 + $0xa0] sm:$0xff] }
 0x25c   :  { %1961 = vmatpush.msra.mxu0 %v1942_v39 }
 0x25d   :  { %1792 = vmatpush.msrb.mxu1 %v1557_v54  ;;  %v1916_v54 = vld [vmem:[#allocation6 + $0xb0] sm:$0xff] }
 0x25e   :  { %1962 = vmatpush.msra.mxu0 %v1938_v42 }
 0x25f   :  { %1793 = vmatpush.msrb.mxu1 %v1548_v0  ;;  %v1917_v0 = vld [vmem:[#allocation6 + $0xb8] sm:$0xff] }
 0x260   :  { %1963 = vmatpush.msra.mxu0 %v1934_v50 }
 0x261   :  { %1794 = vmatpush.msrb.mxu1 %v1539_v2  ;;  %1734 = vmatmul.f32.vlgmr.msra.gmra.mxu2 %v1457_v57  ;;  %v1910_v2 = vld [vmem:[#allocation6 + $0x80] sm:$0xff] }
 0x262   :  { %1711 = vmatmul.f32.vlgmr.msra.gmra.mxu1 %v1457_v57  ;;  %1757 = vmatmul.f32.vlgmr.msra.gmra.mxu3 %v1457_v57 }
 0x263   :  { %1780 = vmatmul.f32.vlgmr.msrb.gmra.mxu0 %v1457_v57  ;;  %1795 = vmatpush.msrb.mxu1 %v1530_v3 }
 0x264   :  { %1964 = vmatpush.msra.mxu0 %v1930_v53 }
 0x265   :  { %1796 = vmatpush.msrb.mxu1 %v1521_v4  ;;  %v1912_v4 = vld [vmem:[#allocation6 + $0x90] sm:$0xff] }
 0x267   :  { %1797 = vmatpush.msrb.mxu1 %v1512_v5  ;;  %v1913_v5 = vld [vmem:[#allocation6 + $0x98] sm:$0xff] }
 0x269   :  { %1798 = vmatpush.msrb.mxu1 %v1503_v45  ;;  %1737 = vmatmul.f32.gmra.mxu2 %v1458_v63  ;;  %v1906_v45 = vld [vmem:[#allocation6 + $0x60] sm:$0xff] }
 0x26a   :  { %1714 = vmatmul.f32.gmra.mxu1 %v1458_v63  ;;  %1760 = vmatmul.f32.gmra.mxu3 %v1458_v63 }
 0x26b   :  { %1783 = vmatmul.f32.gmra.mxu0 %v1458_v63  ;;  %1799 = vmatpush.msrb.mxu1 %v1494_v47 }
 0x26d   :  { %1800 = vmatpush.msrb.mxu1 %v1485_v1 }
 0x26f   :  { %1801 = vmatpush.msrb.mxu1 %v1476_v6 }
 0x271   :  { %1802 = vmatpush.msrb.mxu1 %v1467_v8  ;;  %v1816_v3 = vpop.permute.xlu1 %1815  ;;  %v1908_v8 = vld [vmem:[#allocation6 + $0x70] sm:$0xff] }
 0x272   :  { %1803 = vmatmul.f32.vlgmr.msrb.gmra.mxu1 %v1457_v57  ;;  %v1926_v57 = vld [vmem:[#allocation6 + $0x100] sm:$0xff] }
 0x273   :  { %1998 = vmatpush.msra.mxu1 %v1956_v29  ;;  %1965 = vmatpush.msra.mxu0 %v1926_v57  ;;  %v1900_v29 = vld [vmem:[#allocation6 + $0x30] sm:$0xff] }
 0x275   :  { %1999 = vmatpush.msra.mxu1 %v1952_v34  ;;  %1966 = vmatpush.msra.mxu0 %v1922_v7  ;;  %v1895_v34 = vld [vmem:[#allocation6 + $0x8] sm:$0xff] }
 0x277   :  { %2000 = vmatpush.msra.mxu1 %v1948_v37  ;;  %1967 = vmatpush.msra.mxu0 %v1918_v61 }
 0x279   :  { %2001 = vmatpush.msra.mxu1 %v1944_v40  ;;  %1968 = vmatpush.msra.mxu0 %v1914_v30  ;;  %v1868_v37 = vpop.permute.xlu1 %1867 }
 0x27a   :  { %1806 = vmatmul.f32.gmra.mxu1 %v1458_v63  ;;  %v1921_v63 = vld [vmem:[#allocation6 + $0xd8] sm:$0xff] }
 0x27b   :  { %2002 = vmatpush.msra.mxu1 %v1940_v43  ;;  %1969 = vmatpush.msra.mxu0 %v1910_v2 }
 0x27d   :  { %2003 = vmatpush.msra.mxu1 %v1936_v51  ;;  %1970 = vmatpush.msra.mxu0 %v1906_v45 }
 0x27f   :  { %2004 = vmatpush.msra.mxu1 %v1932_v44 }
 0x281   :  { %2005 = vmatpush.msra.mxu1 %v1928_v58 }
 0x283   :  { %2006 = vmatpush.msra.mxu1 %v1924_v46 }
 0x285   :  { %2007 = vmatpush.msra.mxu1 %v1920_v62 }
 0x287   :  { %2008 = vmatpush.msra.mxu1 %v1916_v54 }
 0x289   :  { %2009 = vmatpush.msra.mxu1 %v1912_v4 }
 0x28b   :  { %2010 = vmatpush.msra.mxu1 %v1908_v8 }
 0x2ce   :  { %v1620_v10 = vpop.f32.mrf.mxu1 }
 0x2cf   :  { %v1689_v55 = vpop.f32.mrf.mxu0 }
 0x2d4   :  { %v1643_v11 = vpop.f32.mrf.mxu2 }
 0x2d5   :  { %v1666_v12 = vpop.f32.mrf.mxu3 }
 0x2d7   :  { %v1623_v14 = vpop.f32.mrf.mxu1 }
 0x2d8   :  { %v1692_v15 = vpop.f32.mrf.mxu0 }
 0x2dc   :  { %v1646_v49 = vpop.f32.mrf.mxu2 }
 0x2dd   :  { %v1669_v16 = vpop.f32.mrf.mxu3 }
 0x2df   :  { %v1712_v17 = vpop.f32.mrf.mxu1 }
 0x2e0   :  { %v1781_v18 = vpop.f32.mrf.mxu0 }
 0x2e4   :  { %v1735_v48 = vpop.f32.mrf.mxu2 }
 0x2e5   :  { %v1758_v19 = vpop.f32.mrf.mxu3 }
 0x2e7   :  { %v1715_v20 = vpop.f32.mrf.mxu1 }
 0x2e8   :  { %v1784_v21 = vpop.f32.mrf.mxu0 }
 0x2e9   :  { %1822 = vmatpush.msrb.mxu2 %v1784_v21  ;;  %v1931_v21 = vld [vmem:[#allocation6 + $0x128] sm:$0xff] }
 0x2eb   :  { %1823 = vmatpush.msrb.mxu2 %v1781_v18  ;;  %v1947_v18 = vld [vmem:[#allocation6 + $0x1a8] sm:$0xff] }
 0x2ec   :  { %v1738_v9 = vpop.f32.mrf.mxu2 }
 0x2ed   :  { %v1761_v23 = vpop.f32.mrf.mxu3 }
 0x2ee   :  { %1824 = vmatpush.msrb.mxu2 %v1761_v23  ;;  %v1923_v23 = vld [vmem:[#allocation6 + $0xe8] sm:$0xff] }
 0x2ef   :  { %v1804_v52 = vpop.f32.mrf.mxu1 }
 0x2f0   :  { %1825 = vmatpush.msrb.mxu2 %v1758_v19  ;;  %v1943_v19 = vld [vmem:[#allocation6 + $0x188] sm:$0xff] }
 0x2f2   :  { %1826 = vmatpush.msrb.mxu2 %v1738_v9  ;;  %v1911_v9 = vld [vmem:[#allocation6 + $0x88] sm:$0xff] }
 0x2f4   :  { %1827 = vmatpush.msrb.mxu2 %v1735_v48  ;;  %v1939_v48 = vld [vmem:[#allocation6 + $0x168] sm:$0xff] }
 0x2f6   :  { %1828 = vmatpush.msrb.mxu2 %v1715_v20  ;;  %v1935_v20 = vld [vmem:[#allocation6 + $0x148] sm:$0xff] }
 0x2f7   :  { %v1807_v25 = vpop.f32.mrf.mxu1 }
 0x2f8   :  { %1829 = vmatpush.msrb.mxu2 %v1712_v17  ;;  %1856 = vmatpush.msrb.mxu3 %v1807_v25  ;;  %v1951_v17 = vld [vmem:[#allocation6 + $0x1c8] sm:$0xff] }
 0x2f9   :  { %v1907_v25 = vld [vmem:[#allocation6 + $0x68] sm:$0xff] }
 0x2fa   :  { %1830 = vmatpush.msrb.mxu2 %v1692_v15  ;;  %1857 = vmatpush.msrb.mxu3 %v1804_v52  ;;  %v1919_v52 = vld [vmem:[#allocation6 + $0xc8] sm:$0xff] }
 0x2fb   :  { %2061 = vmatmul.msk.f32.vlgmr.msrb.gmra.mxu3 %vm1818_vm2, %v1811_v26  ;;  %v1903_v26 = vld [vmem:[#allocation6 + $0x48] sm:$0xff] }
 0x2fc   :  { %1831 = vmatpush.msrb.mxu2 %v1689_v55  ;;  %v1902_v55 = vld [vmem:[#allocation6 + $0x40] sm:$0xff] }
 0x2fd   :  { %1971 = vmatpush.msra.mxu0 %v1902_v55 }
 0x2fe   :  { %1832 = vmatpush.msrb.mxu2 %v1669_v16  ;;  %v1955_v16 = vld [vmem:[#allocation6 + $0x1e8] sm:$0xff] }
 0x300   :  { %1833 = vmatpush.msrb.mxu2 %v1666_v12  ;;  %v1904_v12 = vld [vmem:[#allocation6 + $0x50] sm:$0xff] }
 0x301   :  { %2011 = vmatpush.msra.mxu1 %v1904_v12 }
 0x302   :  { %1834 = vmatpush.msrb.mxu2 %v1646_v49  ;;  %v1863_v49 = vld [vmem:[%s2358_s5] sm:$0x7] }
 0x303   :  { %2012 = vmatpush.msra.mxu1 %v1900_v29 }
 0x304   :  { %1835 = vmatpush.msrb.mxu2 %v1643_v11 }
 0x306   :  { %1836 = vmatpush.msrb.mxu2 %v1623_v14  ;;  %v1905_v14 = vld [vmem:[#allocation6 + $0x58] sm:$0xff] }
 0x308   :  { %1837 = vmatpush.msrb.mxu2 %v1620_v10  ;;  %v1909_v10 = vld [vmem:[#allocation6 + $0x78] sm:$0xff] }
 0x309   :  { %1838 = vmatmul.f32.vlgmr.msrb.gmra.mxu2 %v1810_v27  ;;  %v1898_v27 = vld [vmem:[#allocation6 + $0x20] sm:$0xff] }
 0x30a   :  { %2018 = vmatpush.msra.mxu2 %v1957_v32  ;;  %1972 = vmatpush.msra.mxu0 %v1898_v27  ;;  %v1901_v32 = vld [vmem:[#allocation6 + $0x38] sm:$0xff] }
 0x30c   :  { %2019 = vmatpush.msra.mxu2 %v1953_v35  ;;  %v1896_v35 = vld [vmem:[#allocation6 + $0x10] sm:$0xff]  ;;  %1973 = vmatpush.msra.mxu0 %v1894_v33 }
 0x30d   :  { %2013 = vmatpush.msra.mxu1 %v1896_v35 }
 0x30e   :  { %2020 = vmatpush.msra.mxu2 %v1949_v38 }
 0x310   :  { %2021 = vmatpush.msra.mxu2 %v1945_v41 }
 0x312   :  { %2022 = vmatpush.msra.mxu2 %v1941_v13 }
 0x314   :  { %2023 = vmatpush.msra.mxu2 %v1937_v31 }
 0x316   :  { %2024 = vmatpush.msra.mxu2 %v1933_v56 }
 0x318   :  { %2025 = vmatpush.msra.mxu2 %v1929_v60 }
 0x31a   :  { %2026 = vmatpush.msra.mxu2 %v1925_v59 }
 0x31c   :  { %2027 = vmatpush.msra.mxu2 %v1921_v63 }
 0x31e   :  { %2028 = vmatpush.msra.mxu2 %v1917_v0 }
 0x320   :  { %2029 = vmatpush.msra.mxu2 %v1913_v5 }
 0x322   :  { %2030 = vmatpush.msra.mxu2 %v1909_v10 }
 0x324   :  { %2031 = vmatpush.msra.mxu2 %v1905_v14 }
 0x326   :  { %2032 = vmatpush.msra.mxu2 %v1901_v32 }
 0x328   :  { %2033 = vmatpush.msra.mxu2 %v1897_v36 }
 0x37e   :  { %v1859_v1 = vpop.f32.mrf.mxu3 }
 0x38c   :  { %v1839_v47 = vpop.f32.mrf.mxu2 }
 0x38d   :  { %v1840_v6 = vadd.f32 %v1839_v47, %v1816_v3 }
 0x38f   :  { %v1860_v11 = vadd.f32 %v1859_v1, %v1840_v6 }
 0x391   :  { %v1862_v15 = vmax.f32 %v1860_v11, 0.0 }
 0x393   :  { %1889 = vmatpush.msra.mxu3 %v1862_v15 }
 0x394   :  { %2062 = vmatmul.msk.f32.vlgmr.msra.gmra.mxu3 %vm1870_vm3, %v1863_v49 }
 0x395   :  { %1978 = vmatpush.msrb.mxu3 %v1955_v16 }
 0x397   :  { %1979 = vmatpush.msrb.mxu3 %v1951_v17 }
 0x399   :  { %1980 = vmatpush.msrb.mxu3 %v1947_v18 }
 0x39b   :  { %1981 = vmatpush.msrb.mxu3 %v1943_v19 }
 0x39d   :  { %1982 = vmatpush.msrb.mxu3 %v1939_v48 }
 0x39f   :  { %1983 = vmatpush.msrb.mxu3 %v1935_v20 }
 0x3a1   :  { %1984 = vmatpush.msrb.mxu3 %v1931_v21 }
 0x3a3   :  { %1985 = vmatpush.msrb.mxu3 %v1927_v22 }
 0x3a5   :  { %1986 = vmatpush.msrb.mxu3 %v1923_v23 }
 0x3a7   :  { %1987 = vmatpush.msrb.mxu3 %v1919_v52 }
 0x3a9   :  { %1988 = vmatpush.msrb.mxu3 %v1915_v24 }
 0x3ab   :  { %1989 = vmatpush.msrb.mxu3 %v1911_v9 }
 0x3ad   :  { %1990 = vmatpush.msrb.mxu3 %v1907_v25 }
 0x3af   :  { %1991 = vmatpush.msrb.mxu3 %v1903_v26 }
 0x3b1   :  { %1992 = vmatpush.msrb.mxu3 %v1899_v28 }
 0x3b3   :  { %1993 = vmatpush.msrb.mxu3 %v1895_v34 }
 0x417   :  { %v1891_v38 = vpop.f32.mrf.mxu3 }
 0x418   :  { %v1892_v39 = vadd.f32 %v1891_v38, %v1868_v37 }
 0x41a   :  { %1974 = vmatmul.f32.vlgmr.msra.gmra.mxu0 %v1892_v39  ;;  %1994 = vmatmul.f32.vlgmr.msrb.gmra.mxu3 %v1892_v39 }
 0x41b   :  { %2014 = vmatmul.f32.vlgmr.msra.gmra.mxu1 %v1892_v39  ;;  %2034 = vmatmul.f32.vlgmr.msra.gmra.mxu2 %v1892_v39 }
 0x497   :  { %v1975_v43 = vpop.f32.mrf.mxu0 }
 0x498   :  { %v2015_v50 = vpop.f32.mrf.mxu1 }
 0x49d   :  { %v1995_v40 = vpop.f32.mrf.mxu3 }
 0x49e   :  { %v2040_v41 = vrot.slane %v1995_v40, 4  ;;  %v2035_v42 = vpop.f32.mrf.mxu2 }
 0x49f   :  { %v2046_v13 = vrot.slane %v2035_v42, 4 }
 0x4a0   :  { %v2041_v51 = vsel %vm1405_vm0, %v1975_v43, %v2040_v41 }
 0x4a1   :  { %2043 = vst [vmem:[%s2363_s10] sm:$0x77] %v2041_v51  ;;  %v2047_v31 = vsel %vm1405_vm0, %v2015_v50, %v2046_v13 }
 0x4a2   :  { %2063 = vst [vmem:[%s2363_s10 + $0x8] sm:$0x77] %v2047_v31 }
 0x4a3   :  { %2055 = vsyncpa [#allocation3], 1 }
 0x4a4   :  { %2056 = vsyncpa [#allocation5], 1 }

</bundles_post_ra>
